<compile_context>
chip_gen: v7x
topology: tpu7x:2x2x1
jax: 0.10.0
libtpu: 0.0.40
codegen_flags: <defaults>
</compile_context>

<pallas_src>
import math
import functools

import jax
import jax.numpy as jnp
import numpy as np
from jax.experimental import pallas as pl
from jax.experimental.pallas import tpu as pltpu


# ----------------------------------------------------------------------------
# Pallas kernel: T fused steps of (attention pooling + L shared LSTMCell layers)
# ----------------------------------------------------------------------------
def attn_encoder_kernel(
    attn_ref,       # (N*B, A)       bf16, row r = n*B + b
    prior_ref,      # (N*B, 1)       f32, prior_map ** gamma, flattened
    state_ref,      # (2L, B, H)     f32, [0:L]=hx, [L:2L]=cx
    wattn_ref,      # (A+H+1, H)     bf16, rows [Wa; Wh; v^T]
    wlstm_ref,      # (4, A+H+1, H)  bf16, per gate g: [Wih_g; Whh_g; b_g]
    state_out_ref,  # (2L, B, H)     f32 (aliased onto state_ref's buffer)
    w_out_ref,      # (N*B, 1)       f32, last-step attention weights
    *, N, B, A, H, L, T,
):
    f32 = jnp.float32

    # ---- loop-invariant loads / upcasts (hoisted out of the step loop) -----
    attn_b = attn_ref[...]                                   # bf16 -> MXU input
    attn_f = attn_b.astype(f32)                              # f32 for weighting
    attn_ch = [attn_f[n * B:(n + 1) * B, :] for n in range(N)]
    prior_ch = [prior_ref[n * B:(n + 1) * B, :] for n in range(N)]

    Wa_b = wattn_ref[0:A, :]                                  # (A,H) bf16
    Wh_f = wattn_ref[A:A + H, :].astype(f32)                  # (H,H)
    v_row = wattn_ref[A + H:A + H + 1, :].astype(f32)         # (1,H)

    Wih_f = [wlstm_ref[k, 0:A, :].astype(f32) for k in range(4)]        # (A,H)
    Whh_f = [wlstm_ref[k, A:A + H, :].astype(f32) for k in range(4)]    # (H,H)
    b_g = [wlstm_ref[k, A + H:A + H + 1, :].astype(f32) for k in range(4)]

    # Attention projection of the step-invariant memory: ONE big MXU matmul,
    # bf16 x bf16 with f32 accumulation, hoisted out of the recurrence.
    proj = jnp.dot(attn_b, Wa_b, preferred_element_type=f32)  # (N*B, H) f32
    proj_ch = [proj[n * B:(n + 1) * B, :] for n in range(N)]

    h0 = tuple(state_ref[i, :, :] for i in range(L))
    c0 = tuple(state_ref[L + i, :, :] for i in range(L))
    w0 = tuple(jnp.zeros((B, 1), f32) for _ in range(N))

    def step(_, carry):
        hs, cs, _ = carry
        prev = hs[L - 1]                                                # (B,H)

        # -- attention scores (per sequence chunk; adds are free VPU work) ---
        prev_proj = jnp.dot(prev, Wh_f, preferred_element_type=f32)     # (B,H)
        e_ch = []
        for n in range(N):
            t_n = jnp.tanh(proj_ch[n] + prev_proj)                      # (B,H)
            # e on VPU/XLU (multiply + lane reduce), not a 1-column MXU matmul
            e_ch.append(jnp.sum(t_n * v_row, axis=1, keepdims=True))    # (B,1)

        # -- grouped softmax over the sequence axis (per batch column) -------
        m_b = e_ch[0]
        for n in range(1, N):
            m_b = jnp.maximum(m_b, e_ch[n])                             # group max
        ex_ch = [jnp.exp(e_ch[n] - m_b) for n in range(N)]
        z_b = ex_ch[0]
        for n in range(1, N):
            z_b = z_b + ex_ch[n]
        inv_z = 1.0 / jnp.maximum(z_b, 1e-30)      # guarded (z_b >= 1 anyway)

        # -- attention weights, weighted sequence sum ------------------------
        w_ch, den, num = [], None, None
        for n in range(N):
            w_n = ex_ch[n] * inv_z * prior_ch[n]                        # (B,1)
            w_ch.append(w_n)
            den = w_n if den is None else den + w_n
            num = w_n * attn_ch[n] if num is None else num + w_n * attn_ch[n]
        s = num / jnp.maximum(den, 1e-5)                                # (B,A)

        # -- stacked shared-weight LSTMCell (per-gate, lane-aligned blocks) --
        x = s
        new_h, new_c = [], []
        for i in range(L):
            hp, cp = hs[i], cs[i]
            pre = [jnp.dot(x, Wih_f[k], preferred_element_type=f32)
                   + jnp.dot(hp, Whh_f[k], preferred_element_type=f32)
                   + b_g[k]
                   for k in range(4)]                                   # 4x(B,H)
            i_gate = jax.nn.sigmoid(pre[0])
            f_gate = jax.nn.sigmoid(pre[1])
            g_gate = jnp.tanh(pre[2])
            o_gate = jax.nn.sigmoid(pre[3])
            c = f_gate * cp + i_gate * g_gate
            h = o_gate * jnp.tanh(c)
            new_h.append(h)
            new_c.append(c)
            x = h
        return tuple(new_h), tuple(new_c), tuple(w_ch)

    if T == 1:
        hs, cs, w_fin = step(0, (h0, c0, w0))
    else:
        hs, cs, w_fin = jax.lax.fori_loop(0, T, step, (h0, c0, w0))

    for i in range(L):
        state_out_ref[i, :, :] = hs[i]
        state_out_ref[L + i, :, :] = cs[i]
    for n in range(N):
        w_out_ref[n * B:(n + 1) * B, :] = w_fin[n]


# ----------------------------------------------------------------------------
# Wrapper
# ----------------------------------------------------------------------------
def attn_encoder_cell(attn, hidden, params, prior_map, *, prior_gamma,
                      num_steps=1):
    """`num_steps` fused applications of AttnEncoderCell (LSTM variant).

    attn: (N, B, A) step-invariant attention memory.
    hidden = (hx, cx), each (L, B, H).  prior_map: (N, B).
    num_steps=1 reproduces the PyTorch module's forward exactly.
    """
    hx0, cx0 = hidden
    Wa, Wh, v, Wih, Whh, b = params
    N, B, A = attn.shape
    L, _, H = hx0.shape
    if L > 1 and A != H:
        raise ValueError("shared rnn_cell feeds h back as x: needs attn_size "
                         "== hidden_size when n_layers > 1")

    f32, bf16 = jnp.float32, jnp.bfloat16

    # Heavy operands in bf16 (halves DMA bytes); accumulation stays f32.
    attn2d = attn.reshape(N * B, A).astype(bf16)              # row = n*B + b
    prior2d = (prior_map.astype(f32) ** prior_gamma).reshape(N * B, 1)

    # Packed operands -> 5 DMAs total instead of 12 tiny ones.
    state = jnp.concatenate([hx0, cx0], axis=0).astype(f32)              # (2L,B,H)
    wattn = jnp.concatenate([Wa, Wh, v.reshape(1, H)], axis=0).astype(bf16)
    wih4 = Wih.reshape(A, 4, H).transpose(1, 0, 2)                        # (4,A,H)
    whh4 = Whh.reshape(H, 4, H).transpose(1, 0, 2)                        # (4,H,H)
    b4 = jnp.reshape(b, (4, 1, H))                                        # (4,1,H)
    wlstm = jnp.concatenate([wih4, whh4, b4], axis=1).astype(bf16)  # (4,A+H+1,H)

    kernel = functools.partial(attn_encoder_kernel,
                               N=N, B=B, A=A, H=H, L=L, T=num_steps)
    vmem = functools.partial(pl.BlockSpec, memory_space=pltpu.MemorySpace.VMEM)

    state_out, w2d = pl.pallas_call(
        kernel,
        out_shape=(jax.ShapeDtypeStruct((2 * L, B, H), f32),
                   jax.ShapeDtypeStruct((N * B, 1), f32)),
        in_specs=[vmem() for _ in range(5)],
        out_specs=(vmem(), vmem()),
        input_output_aliases={2: 0},   # carried state written back in place
    )(attn2d, prior2d, state, wattn, wlstm)

    hx = state_out[:L]
    cx = state_out[L:]
    attn_weights = w2d.reshape(N, B)
    output = hx[-1]
    return output, (hx, cx), attn_weights


# ----------------------------------------------------------------------------
# Pure-JAX reference (mirrors the PyTorch forward; applied num_steps times)
# ----------------------------------------------------------------------------
_P = jax.lax.Precision.HIGHEST


def _reference_step(attn, hidden, params, prior_map, prior_gamma, n_layers):
    hx0, cx0 = hidden
    Wa, Wh, v, Wih, Whh, b = params
    N, B, A = attn.shape
    H = Wh.shape[0]
    prev = hx0[-1]

    aw = (jnp.dot(attn.reshape(-1, A), Wa, precision=_P).reshape(N, B, H)
          + jnp.dot(prev, Wh, precision=_P))
    e = jnp.dot(jnp.tanh(aw).reshape(-1, H), v, precision=_P).reshape(N, B)
    w = jax.nn.softmax(e, axis=0) * prior_map ** prior_gamma
    s = (w[:, :, None] * attn).sum(0) / jnp.maximum(w.sum(0), 1e-5)[:, None]

    x = s
    hs, cs = [], []
    for i in range(n_layers):
        gates = (jnp.dot(x, Wih, precision=_P)
                 + jnp.dot(hx0[i], Whh, precision=_P) + b)
        i_g = jax.nn.sigmoid(gates[:, 0 * H:1 * H])
        f_g = jax.nn.sigmoid(gates[:, 1 * H:2 * H])
        g_g = jnp.tanh(gates[:, 2 * H:3 * H])
        o_g = jax.nn.sigmoid(gates[:, 3 * H:4 * H])
        c = f_g * cx0[i] + i_g * g_g
        h = o_g * jnp.tanh(c)
        hs.append(h)
        cs.append(c)
        x = h
    return x, (jnp.stack(hs, 0), jnp.stack(cs, 0)), w


def reference_forward(attn, hidden, params, prior_map, *, prior_gamma,
                      n_layers, num_steps=1):
    out = w = None
    for _ in range(num_steps):
        out, hidden, w = _reference_step(attn, hidden, params, prior_map,
                                         prior_gamma, n_layers)
    return out, hidden, w


# ----------------------------------------------------------------------------
if __name__ == "__main__":
    N, B, A, H, L = 8, 2, 32, 32, 2       # attn_size == hidden_size (shared cell)
    prior_gamma = 0.5

    key = jax.random.PRNGKey(0)
    ks = jax.random.split(key, 11)

    bound_v = math.sqrt(6.0 / (H + 1))
    v = jax.random.uniform(ks[0], (H, 1), jnp.float32, -bound_v, bound_v)
    bound_w = math.sqrt(6.0 / (A + H))
    Wa = jax.random.uniform(ks[1], (A, H), jnp.float32, -bound_w, bound_w)
    Wh = jax.random.uniform(ks[2], (H, H), jnp.float32, -bound_w, bound_w)
    k_lstm = 1.0 / math.sqrt(H)
    Wih = jax.random.uniform(ks[3], (A, 4 * H), jnp.float32, -k_lstm, k_lstm)
    Whh = jax.random.uniform(ks[4], (H, 4 * H), jnp.float32, -k_lstm, k_lstm)
    b_ih = jax.random.uniform(ks[5], (4 * H,), jnp.float32, -k_lstm, k_lstm)
    b_hh = jax.random.uniform(ks[6], (4 * H,), jnp.float32, -k_lstm, k_lstm)
    b = (b_ih + b_hh).reshape(1, 4 * H)
    params = (Wa, Wh, v, Wih, Whh, b)

    attn = jax.random.normal(ks[7], (N, B, A), jnp.float32)
    hx0 = 0.1 * jax.random.normal(ks[8], (L, B, H), jnp.float32)
    cx0 = 0.1 * jax.random.normal(ks[9], (L, B, H), jnp.float32)
    prior_map = jax.random.uniform(ks[10], (N, B), jnp.float32, 0.1, 1.0)

    # The kernel stores the heavy operands in bf16; the reference consumes the
    # identically-rounded values (upcast to f32) so the comparison isolates the
    # kernel's implementation error rather than the deliberate storage rounding.
    rnd = lambda x: x.astype(jnp.bfloat16).astype(jnp.float32)
    params_q = (rnd(Wa), rnd(Wh), rnd(v), rnd(Wih), rnd(Whh), rnd(b))
    attn_q = rnd(attn)

    # ---- single step (exact module semantics) -------------------------------
    fwd1 = jax.jit(functools.partial(attn_encoder_cell,
                                     prior_gamma=prior_gamma, num_steps=1))
    out, (hx, cx), w = fwd1(attn, (hx0, cx0), params, prior_map)
    jax.block_until_ready((out, hx, cx, w))

    out_r, (hx_r, cx_r), w_r = reference_forward(
        attn_q, (hx0, cx0), params_q, prior_map,
        prior_gamma=prior_gamma, n_layers=L, num_steps=1)

    np.testing.assert_allclose(np.asarray(out), np.asarray(out_r), rtol=2e-3, atol=2e-3)
    np.testing.assert_allclose(np.asarray(hx), np.asarray(hx_r), rtol=2e-3, atol=2e-3)
    np.testing.assert_allclose(np.asarray(cx), np.asarray(cx_r), rtol=2e-3, atol=2e-3)
    np.testing.assert_allclose(np.asarray(w), np.asarray(w_r), rtol=2e-3, atol=2e-3)

    # ---- fused multi-step recurrence (one launch, weights DMA'd once) -------
    T = 4
    fwdT = jax.jit(functools.partial(attn_encoder_cell,
                                     prior_gamma=prior_gamma, num_steps=T))
    outT, (hxT, cxT), wT = fwdT(attn, (hx0, cx0), params, prior_map)
    jax.block_until_ready((outT, hxT, cxT, wT))

    outTr, (hxTr, cxTr), wTr = reference_forward(
        attn_q, (hx0, cx0), params_q, prior_map,
        prior_gamma=prior_gamma, n_layers=L, num_steps=T)

    np.testing.assert_allclose(np.asarray(outT), np.asarray(outTr), rtol=5e-3, atol=5e-3)
    np.testing.assert_allclose(np.asarray(hxT), np.asarray(hxTr), rtol=5e-3, atol=5e-3)
    np.testing.assert_allclose(np.asarray(cxT), np.asarray(cxTr), rtol=5e-3, atol=5e-3)
    np.testing.assert_allclose(np.asarray(wT), np.asarray(wTr), rtol=5e-3, atol=5e-3)

    print("KERNEL_OK")
</pallas_src>

<mosaic_0001>
module attributes {stable_mosaic.version = 11 : i64} {
  func.func @attn_encoder_kernel(%arg0: memref<16x32xbf16, #tpu.memory_space<vmem>>, %arg1: memref<16x1xf32, #tpu.memory_space<vmem>>, %arg2: memref<4x2x32xf32, #tpu.memory_space<vmem>>, %arg3: memref<65x32xbf16, #tpu.memory_space<vmem>>, %arg4: memref<4x65x32xbf16, #tpu.memory_space<vmem>>, %arg5: memref<4x2x32xf32, #tpu.memory_space<vmem>>, %arg6: memref<16x1xf32, #tpu.memory_space<vmem>>) attributes {dimension_semantics = [], scalar_prefetch = 0 : i64, scratch_operands = 0 : i64, tpu.core_type = #tpu.core_type<tc>} {
    %c0 = arith.constant 0 : index
    %c0_0 = arith.constant 0 : index
    %0 = vector.load %arg0[%c0, %c0_0] : memref<16x32xbf16, #tpu.memory_space<vmem>>, vector<16x32xbf16>
    %1 = arith.extf %0 : vector<16x32xbf16> to vector<16x32xf32>
    %2 = vector.extract_strided_slice %1 {offsets = [0, 0], sizes = [2, 32], strides = [1, 1]} : vector<16x32xf32> to vector<2x32xf32>
    %3 = vector.extract_strided_slice %1 {offsets = [2, 0], sizes = [2, 32], strides = [1, 1]} : vector<16x32xf32> to vector<2x32xf32>
    %4 = vector.extract_strided_slice %1 {offsets = [4, 0], sizes = [2, 32], strides = [1, 1]} : vector<16x32xf32> to vector<2x32xf32>
    %5 = vector.extract_strided_slice %1 {offsets = [6, 0], sizes = [2, 32], strides = [1, 1]} : vector<16x32xf32> to vector<2x32xf32>
    %6 = vector.extract_strided_slice %1 {offsets = [8, 0], sizes = [2, 32], strides = [1, 1]} : vector<16x32xf32> to vector<2x32xf32>
    %7 = vector.extract_strided_slice %1 {offsets = [10, 0], sizes = [2, 32], strides = [1, 1]} : vector<16x32xf32> to vector<2x32xf32>
    %8 = vector.extract_strided_slice %1 {offsets = [12, 0], sizes = [2, 32], strides = [1, 1]} : vector<16x32xf32> to vector<2x32xf32>
    %9 = vector.extract_strided_slice %1 {offsets = [14, 0], sizes = [2, 32], strides = [1, 1]} : vector<16x32xf32> to vector<2x32xf32>
    %c0_1 = arith.constant 0 : index
    %c0_2 = arith.constant 0 : index
    %10 = vector.load %arg1[%c0_1, %c0_2] : memref<16x1xf32, #tpu.memory_space<vmem>>, vector<2x1xf32>
    %c2 = arith.constant 2 : index
    %c0_3 = arith.constant 0 : index
    %11 = vector.load %arg1[%c2, %c0_3] : memref<16x1xf32, #tpu.memory_space<vmem>>, vector<2x1xf32>
    %c4 = arith.constant 4 : index
    %c0_4 = arith.constant 0 : index
    %12 = vector.load %arg1[%c4, %c0_4] : memref<16x1xf32, #tpu.memory_space<vmem>>, vector<2x1xf32>
    %c6 = arith.constant 6 : index
    %c0_5 = arith.constant 0 : index
    %13 = vector.load %arg1[%c6, %c0_5] : memref<16x1xf32, #tpu.memory_space<vmem>>, vector<2x1xf32>
    %c8 = arith.constant 8 : index
    %c0_6 = arith.constant 0 : index
    %14 = vector.load %arg1[%c8, %c0_6] : memref<16x1xf32, #tpu.memory_space<vmem>>, vector<2x1xf32>
    %c10 = arith.constant 10 : index
    %c0_7 = arith.constant 0 : index
    %15 = vector.load %arg1[%c10, %c0_7] : memref<16x1xf32, #tpu.memory_space<vmem>>, vector<2x1xf32>
    %c12 = arith.constant 12 : index
    %c0_8 = arith.constant 0 : index
    %16 = vector.load %arg1[%c12, %c0_8] : memref<16x1xf32, #tpu.memory_space<vmem>>, vector<2x1xf32>
    %c14 = arith.constant 14 : index
    %c0_9 = arith.constant 0 : index
    %17 = vector.load %arg1[%c14, %c0_9] : memref<16x1xf32, #tpu.memory_space<vmem>>, vector<2x1xf32>
    %c0_10 = arith.constant 0 : index
    %c0_11 = arith.constant 0 : index
    %18 = vector.load %arg3[%c0_10, %c0_11] : memref<65x32xbf16, #tpu.memory_space<vmem>>, vector<32x32xbf16>
    %c32 = arith.constant 32 : index
    %c0_12 = arith.constant 0 : index
    %19 = vector.load %arg3[%c32, %c0_12] : memref<65x32xbf16, #tpu.memory_space<vmem>>, vector<32x32xbf16>
    %20 = arith.extf %19 : vector<32x32xbf16> to vector<32x32xf32>
    %c64 = arith.constant 64 : index
    %c0_13 = arith.constant 0 : index
    %21 = vector.load %arg3[%c64, %c0_13] : memref<65x32xbf16, #tpu.memory_space<vmem>>, vector<1x32xbf16>
    %22 = arith.extf %21 : vector<1x32xbf16> to vector<1x32xf32>
    %c0_14 = arith.constant 0 : index
    %c0_15 = arith.constant 0 : index
    %c0_16 = arith.constant 0 : index
    %23 = vector.load %arg4[%c0_14, %c0_15, %c0_16] : memref<4x65x32xbf16, #tpu.memory_space<vmem>>, vector<1x32x32xbf16>
    %24 = vector.shape_cast %23 : vector<1x32x32xbf16> to vector<32x32xbf16>
    %25 = arith.extf %24 : vector<32x32xbf16> to vector<32x32xf32>
    %c1 = arith.constant 1 : index
    %c0_17 = arith.constant 0 : index
    %c0_18 = arith.constant 0 : index
    %26 = vector.load %arg4[%c1, %c0_17, %c0_18] : memref<4x65x32xbf16, #tpu.memory_space<vmem>>, vector<1x32x32xbf16>
    %27 = vector.shape_cast %26 : vector<1x32x32xbf16> to vector<32x32xbf16>
    %28 = arith.extf %27 : vector<32x32xbf16> to vector<32x32xf32>
    %c2_19 = arith.constant 2 : index
    %c0_20 = arith.constant 0 : index
    %c0_21 = arith.constant 0 : index
    %29 = vector.load %arg4[%c2_19, %c0_20, %c0_21] : memref<4x65x32xbf16, #tpu.memory_space<vmem>>, vector<1x32x32xbf16>
    %30 = vector.shape_cast %29 : vector<1x32x32xbf16> to vector<32x32xbf16>
    %31 = arith.extf %30 : vector<32x32xbf16> to vector<32x32xf32>
    %c3 = arith.constant 3 : index
    %c0_22 = arith.constant 0 : index
    %c0_23 = arith.constant 0 : index
    %32 = vector.load %arg4[%c3, %c0_22, %c0_23] : memref<4x65x32xbf16, #tpu.memory_space<vmem>>, vector<1x32x32xbf16>
    %33 = vector.shape_cast %32 : vector<1x32x32xbf16> to vector<32x32xbf16>
    %34 = arith.extf %33 : vector<32x32xbf16> to vector<32x32xf32>
    %c0_24 = arith.constant 0 : index
    %c32_25 = arith.constant 32 : index
    %c0_26 = arith.constant 0 : index
    %35 = vector.load %arg4[%c0_24, %c32_25, %c0_26] : memref<4x65x32xbf16, #tpu.memory_space<vmem>>, vector<1x32x32xbf16>
    %36 = vector.shape_cast %35 : vector<1x32x32xbf16> to vector<32x32xbf16>
    %37 = arith.extf %36 : vector<32x32xbf16> to vector<32x32xf32>
    %c1_27 = arith.constant 1 : index
    %c32_28 = arith.constant 32 : index
    %c0_29 = arith.constant 0 : index
    %38 = vector.load %arg4[%c1_27, %c32_28, %c0_29] : memref<4x65x32xbf16, #tpu.memory_space<vmem>>, vector<1x32x32xbf16>
    %39 = vector.shape_cast %38 : vector<1x32x32xbf16> to vector<32x32xbf16>
    %40 = arith.extf %39 : vector<32x32xbf16> to vector<32x32xf32>
    %c2_30 = arith.constant 2 : index
    %c32_31 = arith.constant 32 : index
    %c0_32 = arith.constant 0 : index
    %41 = vector.load %arg4[%c2_30, %c32_31, %c0_32] : memref<4x65x32xbf16, #tpu.memory_space<vmem>>, vector<1x32x32xbf16>
    %42 = vector.shape_cast %41 : vector<1x32x32xbf16> to vector<32x32xbf16>
    %43 = arith.extf %42 : vector<32x32xbf16> to vector<32x32xf32>
    %c3_33 = arith.constant 3 : index
    %c32_34 = arith.constant 32 : index
    %c0_35 = arith.constant 0 : index
    %44 = vector.load %arg4[%c3_33, %c32_34, %c0_35] : memref<4x65x32xbf16, #tpu.memory_space<vmem>>, vector<1x32x32xbf16>
    %45 = vector.shape_cast %44 : vector<1x32x32xbf16> to vector<32x32xbf16>
    %46 = arith.extf %45 : vector<32x32xbf16> to vector<32x32xf32>
    %c0_36 = arith.constant 0 : index
    %c64_37 = arith.constant 64 : index
    %c0_38 = arith.constant 0 : index
    %47 = vector.load %arg4[%c0_36, %c64_37, %c0_38] : memref<4x65x32xbf16, #tpu.memory_space<vmem>>, vector<1x1x32xbf16>
    %48 = vector.shape_cast %47 : vector<1x1x32xbf16> to vector<1x32xbf16>
    %49 = arith.extf %48 : vector<1x32xbf16> to vector<1x32xf32>
    %c1_39 = arith.constant 1 : index
    %c64_40 = arith.constant 64 : index
    %c0_41 = arith.constant 0 : index
    %50 = vector.load %arg4[%c1_39, %c64_40, %c0_41] : memref<4x65x32xbf16, #tpu.memory_space<vmem>>, vector<1x1x32xbf16>
    %51 = vector.shape_cast %50 : vector<1x1x32xbf16> to vector<1x32xbf16>
    %52 = arith.extf %51 : vector<1x32xbf16> to vector<1x32xf32>
    %c2_42 = arith.constant 2 : index
    %c64_43 = arith.constant 64 : index
    %c0_44 = arith.constant 0 : index
    %53 = vector.load %arg4[%c2_42, %c64_43, %c0_44] : memref<4x65x32xbf16, #tpu.memory_space<vmem>>, vector<1x1x32xbf16>
    %54 = vector.shape_cast %53 : vector<1x1x32xbf16> to vector<1x32xbf16>
    %55 = arith.extf %54 : vector<1x32xbf16> to vector<1x32xf32>
    %c3_45 = arith.constant 3 : index
    %c64_46 = arith.constant 64 : index
    %c0_47 = arith.constant 0 : index
    %56 = vector.load %arg4[%c3_45, %c64_46, %c0_47] : memref<4x65x32xbf16, #tpu.memory_space<vmem>>, vector<1x1x32xbf16>
    %57 = vector.shape_cast %56 : vector<1x1x32xbf16> to vector<1x32xbf16>
    %58 = arith.extf %57 : vector<1x32xbf16> to vector<1x32xf32>
    %cst = arith.constant dense<0.000000e+00> : vector<16x32xf32>
    %59 = tpu.matmul %0, %18, %cst {dimension_numbers = #tpu.dot_dimension_numbers<[1], [0], [0], [1], [0, 0, 1, 1], [], []>} : vector<16x32xbf16>, vector<32x32xbf16>, vector<16x32xf32> -> vector<16x32xf32>
    %60 = vector.extract_strided_slice %59 {offsets = [0, 0], sizes = [2, 32], strides = [1, 1]} : vector<16x32xf32> to vector<2x32xf32>
    %61 = vector.extract_strided_slice %59 {offsets = [2, 0], sizes = [2, 32], strides = [1, 1]} : vector<16x32xf32> to vector<2x32xf32>
    %62 = vector.extract_strided_slice %59 {offsets = [4, 0], sizes = [2, 32], strides = [1, 1]} : vector<16x32xf32> to vector<2x32xf32>
    %63 = vector.extract_strided_slice %59 {offsets = [6, 0], sizes = [2, 32], strides = [1, 1]} : vector<16x32xf32> to vector<2x32xf32>
    %64 = vector.extract_strided_slice %59 {offsets = [8, 0], sizes = [2, 32], strides = [1, 1]} : vector<16x32xf32> to vector<2x32xf32>
    %65 = vector.extract_strided_slice %59 {offsets = [10, 0], sizes = [2, 32], strides = [1, 1]} : vector<16x32xf32> to vector<2x32xf32>
    %66 = vector.extract_strided_slice %59 {offsets = [12, 0], sizes = [2, 32], strides = [1, 1]} : vector<16x32xf32> to vector<2x32xf32>
    %67 = vector.extract_strided_slice %59 {offsets = [14, 0], sizes = [2, 32], strides = [1, 1]} : vector<16x32xf32> to vector<2x32xf32>
    %c0_48 = arith.constant 0 : index
    %c0_49 = arith.constant 0 : index
    %c0_50 = arith.constant 0 : index
    %68 = vector.load %arg2[%c0_48, %c0_49, %c0_50] : memref<4x2x32xf32, #tpu.memory_space<vmem>>, vector<1x2x32xf32>
    %69 = vector.shape_cast %68 : vector<1x2x32xf32> to vector<2x32xf32>
    %c1_51 = arith.constant 1 : index
    %c0_52 = arith.constant 0 : index
    %c0_53 = arith.constant 0 : index
    %70 = vector.load %arg2[%c1_51, %c0_52, %c0_53] : memref<4x2x32xf32, #tpu.memory_space<vmem>>, vector<1x2x32xf32>
    %71 = vector.shape_cast %70 : vector<1x2x32xf32> to vector<2x32xf32>
    %c2_54 = arith.constant 2 : index
    %c0_55 = arith.constant 0 : index
    %c0_56 = arith.constant 0 : index
    %72 = vector.load %arg2[%c2_54, %c0_55, %c0_56] : memref<4x2x32xf32, #tpu.memory_space<vmem>>, vector<1x2x32xf32>
    %73 = vector.shape_cast %72 : vector<1x2x32xf32> to vector<2x32xf32>
    %c3_57 = arith.constant 3 : index
    %c0_58 = arith.constant 0 : index
    %c0_59 = arith.constant 0 : index
    %74 = vector.load %arg2[%c3_57, %c0_58, %c0_59] : memref<4x2x32xf32, #tpu.memory_space<vmem>>, vector<1x2x32xf32>
    %75 = vector.shape_cast %74 : vector<1x2x32xf32> to vector<2x32xf32>
    %cst_60 = arith.constant dense<0.000000e+00> : vector<2x32xf32>
    %76 = tpu.matmul %71, %20, %cst_60 {dimension_numbers = #tpu.dot_dimension_numbers<[1], [0], [0], [1], [0, 0, 1, 1], [], []>} : vector<2x32xf32>, vector<32x32xf32>, vector<2x32xf32> -> vector<2x32xf32>
    %77 = arith.addf %60, %76 : vector<2x32xf32>
    %78 = math.tanh %77 : vector<2x32xf32>
    %79 = vector.broadcast %22 : vector<1x32xf32> to vector<2x32xf32>
    %80 = arith.mulf %78, %79 : vector<2x32xf32>
    %cst_61 = arith.constant dense<0.000000e+00> : vector<2xf32>
    %81 = vector.multi_reduction <add>, %80, %cst_61 [1] : vector<2x32xf32> to vector<2xf32>
    %82 = vector.shape_cast %81 : vector<2xf32> to vector<2x1xf32>
    %83 = arith.addf %61, %76 : vector<2x32xf32>
    %84 = math.tanh %83 : vector<2x32xf32>
    %85 = vector.broadcast %22 : vector<1x32xf32> to vector<2x32xf32>
    %86 = arith.mulf %84, %85 : vector<2x32xf32>
    %cst_62 = arith.constant dense<0.000000e+00> : vector<2xf32>
    %87 = vector.multi_reduction <add>, %86, %cst_62 [1] : vector<2x32xf32> to vector<2xf32>
    %88 = vector.shape_cast %87 : vector<2xf32> to vector<2x1xf32>
    %89 = arith.addf %62, %76 : vector<2x32xf32>
    %90 = math.tanh %89 : vector<2x32xf32>
    %91 = vector.broadcast %22 : vector<1x32xf32> to vector<2x32xf32>
    %92 = arith.mulf %90, %91 : vector<2x32xf32>
    %cst_63 = arith.constant dense<0.000000e+00> : vector<2xf32>
    %93 = vector.multi_reduction <add>, %92, %cst_63 [1] : vector<2x32xf32> to vector<2xf32>
    %94 = vector.shape_cast %93 : vector<2xf32> to vector<2x1xf32>
    %95 = arith.addf %63, %76 : vector<2x32xf32>
    %96 = math.tanh %95 : vector<2x32xf32>
    %97 = vector.broadcast %22 : vector<1x32xf32> to vector<2x32xf32>
    %98 = arith.mulf %96, %97 : vector<2x32xf32>
    %cst_64 = arith.constant dense<0.000000e+00> : vector<2xf32>
    %99 = vector.multi_reduction <add>, %98, %cst_64 [1] : vector<2x32xf32> to vector<2xf32>
    %100 = vector.shape_cast %99 : vector<2xf32> to vector<2x1xf32>
    %101 = arith.addf %64, %76 : vector<2x32xf32>
    %102 = math.tanh %101 : vector<2x32xf32>
    %103 = vector.broadcast %22 : vector<1x32xf32> to vector<2x32xf32>
    %104 = arith.mulf %102, %103 : vector<2x32xf32>
    %cst_65 = arith.constant dense<0.000000e+00> : vector<2xf32>
    %105 = vector.multi_reduction <add>, %104, %cst_65 [1] : vector<2x32xf32> to vector<2xf32>
    %106 = vector.shape_cast %105 : vector<2xf32> to vector<2x1xf32>
    %107 = arith.addf %65, %76 : vector<2x32xf32>
    %108 = math.tanh %107 : vector<2x32xf32>
    %109 = vector.broadcast %22 : vector<1x32xf32> to vector<2x32xf32>
    %110 = arith.mulf %108, %109 : vector<2x32xf32>
    %cst_66 = arith.constant dense<0.000000e+00> : vector<2xf32>
    %111 = vector.multi_reduction <add>, %110, %cst_66 [1] : vector<2x32xf32> to vector<2xf32>
    %112 = vector.shape_cast %111 : vector<2xf32> to vector<2x1xf32>
    %113 = arith.addf %66, %76 : vector<2x32xf32>
    %114 = math.tanh %113 : vector<2x32xf32>
    %115 = vector.broadcast %22 : vector<1x32xf32> to vector<2x32xf32>
    %116 = arith.mulf %114, %115 : vector<2x32xf32>
    %cst_67 = arith.constant dense<0.000000e+00> : vector<2xf32>
    %117 = vector.multi_reduction <add>, %116, %cst_67 [1] : vector<2x32xf32> to vector<2xf32>
    %118 = vector.shape_cast %117 : vector<2xf32> to vector<2x1xf32>
    %119 = arith.addf %67, %76 : vector<2x32xf32>
    %120 = math.tanh %119 : vector<2x32xf32>
    %121 = vector.broadcast %22 : vector<1x32xf32> to vector<2x32xf32>
    %122 = arith.mulf %120, %121 : vector<2x32xf32>
    %cst_68 = arith.constant dense<0.000000e+00> : vector<2xf32>
    %123 = vector.multi_reduction <add>, %122, %cst_68 [1] : vector<2x32xf32> to vector<2xf32>
    %124 = vector.shape_cast %123 : vector<2xf32> to vector<2x1xf32>
    %125 = arith.maximumf %82, %88 : vector<2x1xf32>
    %126 = arith.maximumf %125, %94 : vector<2x1xf32>
    %127 = arith.maximumf %126, %100 : vector<2x1xf32>
    %128 = arith.maximumf %127, %106 : vector<2x1xf32>
    %129 = arith.maximumf %128, %112 : vector<2x1xf32>
    %130 = arith.maximumf %129, %118 : vector<2x1xf32>
    %131 = arith.maximumf %130, %124 : vector<2x1xf32>
    %132 = arith.subf %82, %131 : vector<2x1xf32>
    %133 = math.exp %132 : vector<2x1xf32>
    %134 = arith.subf %88, %131 : vector<2x1xf32>
    %135 = math.exp %134 : vector<2x1xf32>
    %136 = arith.subf %94, %131 : vector<2x1xf32>
    %137 = math.exp %136 : vector<2x1xf32>
    %138 = arith.subf %100, %131 : vector<2x1xf32>
    %139 = math.exp %138 : vector<2x1xf32>
    %140 = arith.subf %106, %131 : vector<2x1xf32>
    %141 = math.exp %140 : vector<2x1xf32>
    %142 = arith.subf %112, %131 : vector<2x1xf32>
    %143 = math.exp %142 : vector<2x1xf32>
    %144 = arith.subf %118, %131 : vector<2x1xf32>
    %145 = math.exp %144 : vector<2x1xf32>
    %146 = arith.subf %124, %131 : vector<2x1xf32>
    %147 = math.exp %146 : vector<2x1xf32>
    %148 = arith.addf %133, %135 : vector<2x1xf32>
    %149 = arith.addf %148, %137 : vector<2x1xf32>
    %150 = arith.addf %149, %139 : vector<2x1xf32>
    %151 = arith.addf %150, %141 : vector<2x1xf32>
    %152 = arith.addf %151, %143 : vector<2x1xf32>
    %153 = arith.addf %152, %145 : vector<2x1xf32>
    %154 = arith.addf %153, %147 : vector<2x1xf32>
    %cst_69 = arith.constant 1.000000e-30 : f32
    %155 = vector.broadcast %cst_69 : f32 to vector<2x1xf32>
    %156 = arith.maximumf %154, %155 : vector<2x1xf32>
    %cst_70 = arith.constant 1.000000e+00 : f32
    %157 = vector.broadcast %cst_70 : f32 to vector<2x1xf32>
    %158 = arith.divf %157, %156 : vector<2x1xf32>
    %159 = arith.mulf %133, %158 : vector<2x1xf32>
    %160 = arith.mulf %159, %10 : vector<2x1xf32>
    %161 = vector.broadcast %160 : vector<2x1xf32> to vector<2x32xf32>
    %162 = arith.mulf %161, %2 : vector<2x32xf32>
    %163 = arith.mulf %135, %158 : vector<2x1xf32>
    %164 = arith.mulf %163, %11 : vector<2x1xf32>
    %165 = arith.addf %160, %164 : vector<2x1xf32>
    %166 = vector.broadcast %164 : vector<2x1xf32> to vector<2x32xf32>
    %167 = arith.mulf %166, %3 : vector<2x32xf32>
    %168 = arith.addf %162, %167 : vector<2x32xf32>
    %169 = arith.mulf %137, %158 : vector<2x1xf32>
    %170 = arith.mulf %169, %12 : vector<2x1xf32>
    %171 = arith.addf %165, %170 : vector<2x1xf32>
    %172 = vector.broadcast %170 : vector<2x1xf32> to vector<2x32xf32>
    %173 = arith.mulf %172, %4 : vector<2x32xf32>
    %174 = arith.addf %168, %173 : vector<2x32xf32>
    %175 = arith.mulf %139, %158 : vector<2x1xf32>
    %176 = arith.mulf %175, %13 : vector<2x1xf32>
    %177 = arith.addf %171, %176 : vector<2x1xf32>
    %178 = vector.broadcast %176 : vector<2x1xf32> to vector<2x32xf32>
    %179 = arith.mulf %178, %5 : vector<2x32xf32>
    %180 = arith.addf %174, %179 : vector<2x32xf32>
    %181 = arith.mulf %141, %158 : vector<2x1xf32>
    %182 = arith.mulf %181, %14 : vector<2x1xf32>
    %183 = arith.addf %177, %182 : vector<2x1xf32>
    %184 = vector.broadcast %182 : vector<2x1xf32> to vector<2x32xf32>
    %185 = arith.mulf %184, %6 : vector<2x32xf32>
    %186 = arith.addf %180, %185 : vector<2x32xf32>
    %187 = arith.mulf %143, %158 : vector<2x1xf32>
    %188 = arith.mulf %187, %15 : vector<2x1xf32>
    %189 = arith.addf %183, %188 : vector<2x1xf32>
    %190 = vector.broadcast %188 : vector<2x1xf32> to vector<2x32xf32>
    %191 = arith.mulf %190, %7 : vector<2x32xf32>
    %192 = arith.addf %186, %191 : vector<2x32xf32>
    %193 = arith.mulf %145, %158 : vector<2x1xf32>
    %194 = arith.mulf %193, %16 : vector<2x1xf32>
    %195 = arith.addf %189, %194 : vector<2x1xf32>
    %196 = vector.broadcast %194 : vector<2x1xf32> to vector<2x32xf32>
    %197 = arith.mulf %196, %8 : vector<2x32xf32>
    %198 = arith.addf %192, %197 : vector<2x32xf32>
    %199 = arith.mulf %147, %158 : vector<2x1xf32>
    %200 = arith.mulf %199, %17 : vector<2x1xf32>
    %201 = arith.addf %195, %200 : vector<2x1xf32>
    %202 = vector.broadcast %200 : vector<2x1xf32> to vector<2x32xf32>
    %203 = arith.mulf %202, %9 : vector<2x32xf32>
    %204 = arith.addf %198, %203 : vector<2x32xf32>
    %cst_71 = arith.constant 9.99999974E-6 : f32
    %205 = vector.broadcast %cst_71 : f32 to vector<2x1xf32>
    %206 = arith.maximumf %201, %205 : vector<2x1xf32>
    %207 = vector.broadcast %206 : vector<2x1xf32> to vector<2x32xf32>
    %208 = arith.divf %204, %207 : vector<2x32xf32>
    %cst_72 = arith.constant dense<0.000000e+00> : vector<2x32xf32>
    %209 = tpu.matmul %208, %25, %cst_72 {dimension_numbers = #tpu.dot_dimension_numbers<[1], [0], [0], [1], [0, 0, 1, 1], [], []>} : vector<2x32xf32>, vector<32x32xf32>, vector<2x32xf32> -> vector<2x32xf32>
    %cst_73 = arith.constant dense<0.000000e+00> : vector<2x32xf32>
    %210 = tpu.matmul %69, %37, %cst_73 {dimension_numbers = #tpu.dot_dimension_numbers<[1], [0], [0], [1], [0, 0, 1, 1], [], []>} : vector<2x32xf32>, vector<32x32xf32>, vector<2x32xf32> -> vector<2x32xf32>
    %211 = arith.addf %209, %210 : vector<2x32xf32>
    %212 = vector.broadcast %49 : vector<1x32xf32> to vector<2x32xf32>
    %213 = arith.addf %211, %212 : vector<2x32xf32>
    %cst_74 = arith.constant dense<0.000000e+00> : vector<2x32xf32>
    %214 = tpu.matmul %208, %28, %cst_74 {dimension_numbers = #tpu.dot_dimension_numbers<[1], [0], [0], [1], [0, 0, 1, 1], [], []>} : vector<2x32xf32>, vector<32x32xf32>, vector<2x32xf32> -> vector<2x32xf32>
    %cst_75 = arith.constant dense<0.000000e+00> : vector<2x32xf32>
    %215 = tpu.matmul %69, %40, %cst_75 {dimension_numbers = #tpu.dot_dimension_numbers<[1], [0], [0], [1], [0, 0, 1, 1], [], []>} : vector<2x32xf32>, vector<32x32xf32>, vector<2x32xf32> -> vector<2x32xf32>
    %216 = arith.addf %214, %215 : vector<2x32xf32>
    %217 = vector.broadcast %52 : vector<1x32xf32> to vector<2x32xf32>
    %218 = arith.addf %216, %217 : vector<2x32xf32>
    %cst_76 = arith.constant dense<0.000000e+00> : vector<2x32xf32>
    %219 = tpu.matmul %208, %31, %cst_76 {dimension_numbers = #tpu.dot_dimension_numbers<[1], [0], [0], [1], [0, 0, 1, 1], [], []>} : vector<2x32xf32>, vector<32x32xf32>, vector<2x32xf32> -> vector<2x32xf32>
    %cst_77 = arith.constant dense<0.000000e+00> : vector<2x32xf32>
    %220 = tpu.matmul %69, %43, %cst_77 {dimension_numbers = #tpu.dot_dimension_numbers<[1], [0], [0], [1], [0, 0, 1, 1], [], []>} : vector<2x32xf32>, vector<32x32xf32>, vector<2x32xf32> -> vector<2x32xf32>
    %221 = arith.addf %219, %220 : vector<2x32xf32>
    %222 = vector.broadcast %55 : vector<1x32xf32> to vector<2x32xf32>
    %223 = arith.addf %221, %222 : vector<2x32xf32>
    %cst_78 = arith.constant dense<0.000000e+00> : vector<2x32xf32>
    %224 = tpu.matmul %208, %34, %cst_78 {dimension_numbers = #tpu.dot_dimension_numbers<[1], [0], [0], [1], [0, 0, 1, 1], [], []>} : vector<2x32xf32>, vector<32x32xf32>, vector<2x32xf32> -> vector<2x32xf32>
    %cst_79 = arith.constant dense<0.000000e+00> : vector<2x32xf32>
    %225 = tpu.matmul %69, %46, %cst_79 {dimension_numbers = #tpu.dot_dimension_numbers<[1], [0], [0], [1], [0, 0, 1, 1], [], []>} : vector<2x32xf32>, vector<32x32xf32>, vector<2x32xf32> -> vector<2x32xf32>
    %226 = arith.addf %224, %225 : vector<2x32xf32>
    %227 = vector.broadcast %58 : vector<1x32xf32> to vector<2x32xf32>
    %228 = arith.addf %226, %227 : vector<2x32xf32>
    %229 = arith.negf %213 : vector<2x32xf32>
    %230 = math.exp %229 : vector<2x32xf32>
    %cst_80 = arith.constant 1.000000e+00 : f32
    %231 = vector.broadcast %cst_80 : f32 to vector<2x32xf32>
    %232 = arith.addf %231, %230 : vector<2x32xf32>
    %233 = arith.divf %231, %232 : vector<2x32xf32>
    %234 = arith.negf %218 : vector<2x32xf32>
    %235 = math.exp %234 : vector<2x32xf32>
    %cst_81 = arith.constant 1.000000e+00 : f32
    %236 = vector.broadcast %cst_81 : f32 to vector<2x32xf32>
    %237 = arith.addf %236, %235 : vector<2x32xf32>
    %238 = arith.divf %236, %237 : vector<2x32xf32>
    %239 = math.tanh %223 : vector<2x32xf32>
    %240 = arith.negf %228 : vector<2x32xf32>
    %241 = math.exp %240 : vector<2x32xf32>
    %cst_82 = arith.constant 1.000000e+00 : f32
    %242 = vector.broadcast %cst_82 : f32 to vector<2x32xf32>
    %243 = arith.addf %242, %241 : vector<2x32xf32>
    %244 = arith.divf %242, %243 : vector<2x32xf32>
    %245 = arith.mulf %238, %73 : vector<2x32xf32>
    %246 = arith.mulf %233, %239 : vector<2x32xf32>
    %247 = arith.addf %245, %246 : vector<2x32xf32>
    %248 = math.tanh %247 : vector<2x32xf32>
    %249 = arith.mulf %244, %248 : vector<2x32xf32>
    %cst_83 = arith.constant dense<0.000000e+00> : vector<2x32xf32>
    %250 = tpu.matmul %249, %25, %cst_83 {dimension_numbers = #tpu.dot_dimension_numbers<[1], [0], [0], [1], [0, 0, 1, 1], [], []>} : vector<2x32xf32>, vector<32x32xf32>, vector<2x32xf32> -> vector<2x32xf32>
    %cst_84 = arith.constant dense<0.000000e+00> : vector<2x32xf32>
    %251 = tpu.matmul %71, %37, %cst_84 {dimension_numbers = #tpu.dot_dimension_numbers<[1], [0], [0], [1], [0, 0, 1, 1], [], []>} : vector<2x32xf32>, vector<32x32xf32>, vector<2x32xf32> -> vector<2x32xf32>
    %252 = arith.addf %250, %251 : vector<2x32xf32>
    %253 = vector.broadcast %49 : vector<1x32xf32> to vector<2x32xf32>
    %254 = arith.addf %252, %253 : vector<2x32xf32>
    %cst_85 = arith.constant dense<0.000000e+00> : vector<2x32xf32>
    %255 = tpu.matmul %249, %28, %cst_85 {dimension_numbers = #tpu.dot_dimension_numbers<[1], [0], [0], [1], [0, 0, 1, 1], [], []>} : vector<2x32xf32>, vector<32x32xf32>, vector<2x32xf32> -> vector<2x32xf32>
    %cst_86 = arith.constant dense<0.000000e+00> : vector<2x32xf32>
    %256 = tpu.matmul %71, %40, %cst_86 {dimension_numbers = #tpu.dot_dimension_numbers<[1], [0], [0], [1], [0, 0, 1, 1], [], []>} : vector<2x32xf32>, vector<32x32xf32>, vector<2x32xf32> -> vector<2x32xf32>
    %257 = arith.addf %255, %256 : vector<2x32xf32>
    %258 = vector.broadcast %52 : vector<1x32xf32> to vector<2x32xf32>
    %259 = arith.addf %257, %258 : vector<2x32xf32>
    %cst_87 = arith.constant dense<0.000000e+00> : vector<2x32xf32>
    %260 = tpu.matmul %249, %31, %cst_87 {dimension_numbers = #tpu.dot_dimension_numbers<[1], [0], [0], [1], [0, 0, 1, 1], [], []>} : vector<2x32xf32>, vector<32x32xf32>, vector<2x32xf32> -> vector<2x32xf32>
    %cst_88 = arith.constant dense<0.000000e+00> : vector<2x32xf32>
    %261 = tpu.matmul %71, %43, %cst_88 {dimension_numbers = #tpu.dot_dimension_numbers<[1], [0], [0], [1], [0, 0, 1, 1], [], []>} : vector<2x32xf32>, vector<32x32xf32>, vector<2x32xf32> -> vector<2x32xf32>
    %262 = arith.addf %260, %261 : vector<2x32xf32>
    %263 = vector.broadcast %55 : vector<1x32xf32> to vector<2x32xf32>
    %264 = arith.addf %262, %263 : vector<2x32xf32>
    %cst_89 = arith.constant dense<0.000000e+00> : vector<2x32xf32>
    %265 = tpu.matmul %249, %34, %cst_89 {dimension_numbers = #tpu.dot_dimension_numbers<[1], [0], [0], [1], [0, 0, 1, 1], [], []>} : vector<2x32xf32>, vector<32x32xf32>, vector<2x32xf32> -> vector<2x32xf32>
    %cst_90 = arith.constant dense<0.000000e+00> : vector<2x32xf32>
    %266 = tpu.matmul %71, %46, %cst_90 {dimension_numbers = #tpu.dot_dimension_numbers<[1], [0], [0], [1], [0, 0, 1, 1], [], []>} : vector<2x32xf32>, vector<32x32xf32>, vector<2x32xf32> -> vector<2x32xf32>
    %267 = arith.addf %265, %266 : vector<2x32xf32>
    %268 = vector.broadcast %58 : vector<1x32xf32> to vector<2x32xf32>
    %269 = arith.addf %267, %268 : vector<2x32xf32>
    %270 = arith.negf %254 : vector<2x32xf32>
    %271 = math.exp %270 : vector<2x32xf32>
    %cst_91 = arith.constant 1.000000e+00 : f32
    %272 = vector.broadcast %cst_91 : f32 to vector<2x32xf32>
    %273 = arith.addf %272, %271 : vector<2x32xf32>
    %274 = arith.divf %272, %273 : vector<2x32xf32>
    %275 = arith.negf %259 : vector<2x32xf32>
    %276 = math.exp %275 : vector<2x32xf32>
    %cst_92 = arith.constant 1.000000e+00 : f32
    %277 = vector.broadcast %cst_92 : f32 to vector<2x32xf32>
    %278 = arith.addf %277, %276 : vector<2x32xf32>
    %279 = arith.divf %277, %278 : vector<2x32xf32>
    %280 = math.tanh %264 : vector<2x32xf32>
    %281 = arith.negf %269 : vector<2x32xf32>
    %282 = math.exp %281 : vector<2x32xf32>
    %cst_93 = arith.constant 1.000000e+00 : f32
    %283 = vector.broadcast %cst_93 : f32 to vector<2x32xf32>
    %284 = arith.addf %283, %282 : vector<2x32xf32>
    %285 = arith.divf %283, %284 : vector<2x32xf32>
    %286 = arith.mulf %279, %75 : vector<2x32xf32>
    %287 = arith.mulf %274, %280 : vector<2x32xf32>
    %288 = arith.addf %286, %287 : vector<2x32xf32>
    %289 = math.tanh %288 : vector<2x32xf32>
    %290 = arith.mulf %285, %289 : vector<2x32xf32>
    %c0_94 = arith.constant 0 : index
    %c0_95 = arith.constant 0 : index
    %c0_96 = arith.constant 0 : index
    %291 = vector.load %arg5[%c0_94, %c0_95, %c0_96] : memref<4x2x32xf32, #tpu.memory_space<vmem>>, vector<1x2x32xf32>
    %292 = vector.shape_cast %291 : vector<1x2x32xf32> to vector<2x32xf32>
    %293 = vector.shape_cast %249 : vector<2x32xf32> to vector<1x2x32xf32>
    tpu.vector_store %arg5[%c0_94, %c0_95, %c0_96], %293 {strides = array<i32>} : memref<4x2x32xf32, #tpu.memory_space<vmem>>, vector<1x2x32xf32>,
    %c2_97 = arith.constant 2 : index
    %c0_98 = arith.constant 0 : index
    %c0_99 = arith.constant 0 : index
    %294 = vector.load %arg5[%c2_97, %c0_98, %c0_99] : memref<4x2x32xf32, #tpu.memory_space<vmem>>, vector<1x2x32xf32>
    %295 = vector.shape_cast %294 : vector<1x2x32xf32> to vector<2x32xf32>
    %296 = vector.shape_cast %247 : vector<2x32xf32> to vector<1x2x32xf32>
    tpu.vector_store %arg5[%c2_97, %c0_98, %c0_99], %296 {strides = array<i32>} : memref<4x2x32xf32, #tpu.memory_space<vmem>>, vector<1x2x32xf32>,
    %c1_100 = arith.constant 1 : index
    %c0_101 = arith.constant 0 : index
    %c0_102 = arith.constant 0 : index
    %297 = vector.load %arg5[%c1_100, %c0_101, %c0_102] : memref<4x2x32xf32, #tpu.memory_space<vmem>>, vector<1x2x32xf32>
    %298 = vector.shape_cast %297 : vector<1x2x32xf32> to vector<2x32xf32>
    %299 = vector.shape_cast %290 : vector<2x32xf32> to vector<1x2x32xf32>
    tpu.vector_store %arg5[%c1_100, %c0_101, %c0_102], %299 {strides = array<i32>} : memref<4x2x32xf32, #tpu.memory_space<vmem>>, vector<1x2x32xf32>,
    %c3_103 = arith.constant 3 : index
    %c0_104 = arith.constant 0 : index
    %c0_105 = arith.constant 0 : index
    %300 = vector.load %arg5[%c3_103, %c0_104, %c0_105] : memref<4x2x32xf32, #tpu.memory_space<vmem>>, vector<1x2x32xf32>
    %301 = vector.shape_cast %300 : vector<1x2x32xf32> to vector<2x32xf32>
    %302 = vector.shape_cast %288 : vector<2x32xf32> to vector<1x2x32xf32>
    tpu.vector_store %arg5[%c3_103, %c0_104, %c0_105], %302 {strides = array<i32>} : memref<4x2x32xf32, #tpu.memory_space<vmem>>, vector<1x2x32xf32>,
    %c0_106 = arith.constant 0 : index
    %c0_107 = arith.constant 0 : index
    %303 = vector.load %arg6[%c0_106, %c0_107] : memref<16x1xf32, #tpu.memory_space<vmem>>, vector<2x1xf32>
    tpu.vector_store %arg6[%c0_106, %c0_107], %160 {strides = array<i32>} : memref<16x1xf32, #tpu.memory_space<vmem>>, vector<2x1xf32>,
    %c2_108 = arith.constant 2 : index
    %c0_109 = arith.constant 0 : index
    %304 = vector.load %arg6[%c2_108, %c0_109] : memref<16x1xf32, #tpu.memory_space<vmem>>, vector<2x1xf32>
    tpu.vector_store %arg6[%c2_108, %c0_109], %164 {strides = array<i32>} : memref<16x1xf32, #tpu.memory_space<vmem>>, vector<2x1xf32>,
    %c4_110 = arith.constant 4 : index
    %c0_111 = arith.constant 0 : index
    %305 = vector.load %arg6[%c4_110, %c0_111] : memref<16x1xf32, #tpu.memory_space<vmem>>, vector<2x1xf32>
    tpu.vector_store %arg6[%c4_110, %c0_111], %170 {strides = array<i32>} : memref<16x1xf32, #tpu.memory_space<vmem>>, vector<2x1xf32>,
    %c6_112 = arith.constant 6 : index
    %c0_113 = arith.constant 0 : index
    %306 = vector.load %arg6[%c6_112, %c0_113] : memref<16x1xf32, #tpu.memory_space<vmem>>, vector<2x1xf32>
    tpu.vector_store %arg6[%c6_112, %c0_113], %176 {strides = array<i32>} : memref<16x1xf32, #tpu.memory_space<vmem>>, vector<2x1xf32>,
    %c8_114 = arith.constant 8 : index
    %c0_115 = arith.constant 0 : index
    %307 = vector.load %arg6[%c8_114, %c0_115] : memref<16x1xf32, #tpu.memory_space<vmem>>, vector<2x1xf32>
    tpu.vector_store %arg6[%c8_114, %c0_115], %182 {strides = array<i32>} : memref<16x1xf32, #tpu.memory_space<vmem>>, vector<2x1xf32>,
    %c10_116 = arith.constant 10 : index
    %c0_117 = arith.constant 0 : index
    %308 = vector.load %arg6[%c10_116, %c0_117] : memref<16x1xf32, #tpu.memory_space<vmem>>, vector<2x1xf32>
    tpu.vector_store %arg6[%c10_116, %c0_117], %188 {strides = array<i32>} : memref<16x1xf32, #tpu.memory_space<vmem>>, vector<2x1xf32>,
    %c12_118 = arith.constant 12 : index
    %c0_119 = arith.constant 0 : index
    %309 = vector.load %arg6[%c12_118, %c0_119] : memref<16x1xf32, #tpu.memory_space<vmem>>, vector<2x1xf32>
    tpu.vector_store %arg6[%c12_118, %c0_119], %194 {strides = array<i32>} : memref<16x1xf32, #tpu.memory_space<vmem>>, vector<2x1xf32>,
    %c14_120 = arith.constant 14 : index
    %c0_121 = arith.constant 0 : index
    %310 = vector.load %arg6[%c14_120, %c0_121] : memref<16x1xf32, #tpu.memory_space<vmem>>, vector<2x1xf32>
    tpu.vector_store %arg6[%c14_120, %c0_121], %200 {strides = array<i32>} : memref<16x1xf32, #tpu.memory_space<vmem>>, vector<2x1xf32>,
    return
  }
}

</mosaic_0001>

<bundles_post_ra>
// kernel: attn_encoder_cell.1
= control target key start
LH: loop header
LB: loop body
LE: loop exit
PB: predicated region body
PF: predicated region fallthrough
CT: control target
= control target key end

     0   :  { %v2410_v0 = vmov 0.0|0.0   ;;  %v2411_v2 = vmov 0.0   ;;  %vm2412_vm0 = vmmov 0   ;;  %vm141_vm1 = vcmask 261120   ;;  %s2775_s3 = inlined_call_operand.vmem [shape: bf16[65,32], index: 3, kind: input, shape index: {}]   ;;  %s2776_s0 = inlined_call_operand.vmem [shape: bf16[16,32], index: 0, kind: input, shape index: {}]   ;;  %s2777_s2 = inlined_call_operand.vmem [shape: f32[4,2,32], index: 2, kind: input, shape index: {}, may-alias: {2,5}]   ;;  %s2778_s1 = inlined_call_operand.vmem [shape: f32[16,1], index: 1, kind: input, shape index: {}]   ;;  %s2779_s6 = inlined_call_operand.vmem [shape: f32[16,1], index: 6, kind: output, shape index: {1}]   ;;  %s2780_s4 = inlined_call_operand.vmem [shape: bf16[4,65,32], index: 4, kind: input, shape index: {}]   ;;  %s2781_s5 = inlined_call_operand.vmem [shape: f32[4,2,32], index: 5, kind: output, shape index: {0}, may-alias: {2,5}]  }
   0x1   :  { %2194 = vmatprep.subr.bf16.mxu1 %v2410_v0  ;;  %v1898_v1 = vld [vmem:[%s2775_s3 + $0x10] sm:$0xff]   ;;  %1999 = vmatprep.subr.bf16.mxu0 %v2411_v2  ;;  %v2330_v3 = vld [vmem:[%s2775_s3] sm:$0xff]   ;;  %v1899_v4 = vld [vmem:[%s2775_s3 + $0x18] sm:$0xff]   ;;  %v268_v8 = vlaneseq  ;;  %vm283_vm2 = vcmask 257026   ;;  %vm292_vm3 = vcmask 259076   ;;  %vm273_vm4 = vcmask 254976  }
   0x2   :  { %2196 = vmatpush3.bf16.msra.mxu1 %v1898_v1  ;;  %2015 = vmatprep.mubr.msk.f32.mxu1 %vm2412_vm0, %v2411_v2  ;;  %v2331_v5 = vld [vmem:[%s2775_s3 + $0x8] sm:$0xff]   ;;  %v2471_v6 = vld [vmem:[%s2776_s0] sm:$0xff]   ;;  %vm301_vm5 = vcmask 261126   ;;  %v2413_v55 = vmov 0   ;;  %vm1762_vm6 = vcmask 1024   ;;  %vm1764_vm7 = vcmask 3074  }
   0x3   :  { %2197 = vmatprep.subr.bf16.mxu1 %v2410_v0  ;;  %2003 = vmatprep.mubr.msk.bf16.mxu0 %vm2412_vm0, %v2411_v2  ;;  %v2477_v7 = vld [vmem:[%s2777_s2 + $0x2] sm:$0x3]  ;;  %v269_v20 = vshrl.u32 %v268_v8, 7  ;;  %v47_v22 = vld [vmem:[%s2775_s3 + $0x20] sm:$0x1]  ;;  %vm1766_vm8 = vcmask 5124  }
   0x4   :  { %2000 = vmatpush3.bf16.msra.mxu0 %v2330_v3  ;;  %v48_v28 = vunpack.c.l.bf16 %v47_v22  ;;  %2329 = vset.pattern.permute.xlu1 %v2413_v55  ;;  %vm1768_vm9 = vcmask 7174  }
   0x5   :  { %2001 = vmatprep.subr.bf16.mxu0 %v2411_v2  ;;  %v2492_v29 = vsub.s32 0, %v269_v20  ;;  %2328 = vset.pattern.permute.xlu0 %v2413_v55 }
   0x6   :  { %2199 = vmatpush3.bf16.msra.mxu1 %v1899_v4 }
   0x7   :  { %2206 = vmatprep.subr.bf16.mxu1 %v2410_v0  ;;  %v271_v30 = vrot.slane %v48_v28, %v2492_v29 }
   0x8   :  { %2002 = vmatpush3.bf16.msra.mxu0 %v2331_v5 }
   0x9   :  { %2016 = vmatmul.mubr.msk.f32.vlgmr.msra.gmra.mrb[0].mxu1 %vm141_vm1, %v2477_v7  ;;  %2200 = vmatprep.subr.bf16.mxu0 %v2410_v0 }
   0xa   :  { %2037 = vmatprep.mubr.msk.f32.mxu1 %vm2412_vm0, %v2411_v2 }
   0xb   :  { %2004 = vmatmul.mubr.msk.bf16.vlgmr.msra.gmra.mrb[0].mxu0 %vm141_vm1, %v2471_v6 }
   0xc   :  { %2026 = vmatprep.mubr.msk.f32.mxu0 %vm2412_vm0, %v2411_v2 }
  0xdc   :  { %v262_v9 = vpop.f32.mrb[0].mxu1 }
  0xdd   :  { %v2017_v10 = vpop.f32.mrb[1].mxu1  ;;  %v278_v11 = vrot.slane %v262_v9, 6  ;;  %v287_v12 = vrot.slane %v262_v9, 4  ;;  %v296_v13 = vrot.slane %v262_v9, 2 }
  0xde   :  { %v179_v14 = vpop.f32.mrb[0].mxu0 }
  0xdf   :  { %v266_v15 = vadd.f32 %v262_v9, %v179_v14  ;;  %v280_v16 = vadd.f32 %v278_v11, %v179_v14  ;;  %v289_v17 = vadd.f32 %v287_v12, %v179_v14  ;;  %v298_v18 = vadd.f32 %v296_v13, %v179_v14  ;;  %v2005_v19 = vpop.f32.mrb[1].mxu0 }
  0xe0   :  { %v182_v21 = vpop.f32.mrb[2].mxu0 }
  0xe1   :  { %2338 = vtanh.f32 %v266_v15  ;;  %v305_v23 = vadd.f32 %v262_v9, %v182_v21  ;;  %v311_v24 = vadd.f32 %v278_v11, %v182_v21  ;;  %v317_v25 = vadd.f32 %v287_v12, %v182_v21  ;;  %v2006_v26 = vpop.f32.mrb[3].mxu0 }
  0xe2   :  { %2340 = vtanh.f32 %v280_v16  ;;  %v323_v27 = vadd.f32 %v296_v13, %v182_v21 }
  0xe3   :  { %2342 = vtanh.f32 %v289_v17 }
  0xe4   :  { %2344 = vtanh.f32 %v298_v18 }
  0xe5   :  { %2346 = vtanh.f32 %v305_v23 }
  0xe6   :  { %2348 = vtanh.f32 %v311_v24 }
  0xe7   :  { %2350 = vtanh.f32 %v317_v25 }
  0xe8   :  { %2352 = vtanh.f32 %v323_v27 }
  0xeb   :  { %v2339_v31 = vpop.eup %2338 }
  0xec   :  { %v2341_v32 = vpop.eup %2340  ;;  %v272_v33 = vmul.f32 %v2339_v31, %v271_v30 }
  0xed   :  { %v2343_v34 = vpop.eup %2342  ;;  %v282_v35 = vmul.f32 %v2341_v32, %v271_v30 }
  0xee   :  { %v2345_v36 = vpop.eup %2344  ;;  %v291_v37 = vmul.f32 %v2343_v34, %v271_v30  ;;  %v274_v48 = vsel %vm273_vm4, %v272_v33, 0.0 }
  0xef   :  { %v2347_v38 = vpop.eup %2346  ;;  %v284_v39 = vsel %vm283_vm2, %v282_v35, 0.0  ;;  %v300_v40 = vmul.f32 %v2345_v36, %v271_v30 }
  0xf0   :  { %v2349_v41 = vpop.eup %2348  ;;  %v293_v42 = vsel %vm292_vm3, %v291_v37, 0.0  ;;  %285 = vadd.xlane.f32.xlu0 %v284_v39  ;;  %v307_v43 = vmul.f32 %v2347_v38, %v271_v30 }
  0xf1   :  { %v2351_v44 = vpop.eup %2350  ;;  %294 = vadd.xlane.f32.xlu1 %v293_v42  ;;  %v313_v45 = vmul.f32 %v2349_v41, %v271_v30  ;;  %v302_v50 = vsel %vm301_vm5, %v300_v40, 0.0 }
  0xf2   :  { %v2353_v46 = vpop.eup %2352  ;;  %v319_v47 = vmul.f32 %v2351_v44, %v271_v30  ;;  %v308_v51 = vsel %vm273_vm4, %v307_v43, 0.0 }
  0xf3   :  { %v325_v49 = vmul.f32 %v2353_v46, %v271_v30  ;;  %v314_v52 = vsel %vm283_vm2, %v313_v45, 0.0 }
  0xf4   :  { %275 = vadd.xlane.f32.xlu0 %v274_v48  ;;  %v320_v53 = vsel %vm292_vm3, %v319_v47, 0.0 }
  0xf5   :  { %303 = vadd.xlane.f32.xlu1 %v302_v50  ;;  %v326_v54 = vsel %vm301_vm5, %v325_v49, 0.0 }
  0xf8   :  { %309 = vadd.xlane.f32.xlu0 %v308_v51 }
  0xf9   :  { %315 = vadd.xlane.f32.xlu1 %v314_v52 }
  0xfc   :  { %321 = vadd.xlane.f32.xlu0 %v320_v53 }
  0xfd   :  { %327 = vadd.xlane.f32.xlu1 %v326_v54 }
 0x17d   :  { %v286_v56 = vpop.xlane.xlu0 %285 }
 0x17e   :  { %v295_v57 = vpop.xlane.xlu1 %294  ;;  %v330_v58 = vrot.slane %v286_v56, 2 }
 0x17f   :  { %v334_v60 = vrot.slane %v295_v57, 4 }
 0x181   :  { %v276_v59 = vpop.xlane.xlu0 %275 }
 0x182   :  { %v304_v61 = vpop.xlane.xlu1 %303  ;;  %v332_v62 = vmax.f32 %v276_v59, %v330_v58 }
 0x183   :  { %v338_v63 = vrot.slane %v304_v61, 6 }
 0x184   :  { %v336_v1 = vmax.f32 %v332_v62, %v334_v60  ;;  %v29_v60 = vld [vmem:[%s2778_s1 + $0x4] sm:$0x3]  ;;  %v27_v62 = vld [vmem:[%s2778_s1] sm:$0x3] }
 0x185   :  { %v310_v3 = vpop.xlane.xlu0 %309 }
 0x186   :  { %v316_v4 = vpop.xlane.xlu1 %315  ;;  %v340_v5 = vmax.f32 %v336_v1, %v338_v63  ;;  %v30_v63 = vld [vmem:[%s2778_s1 + $0x6] sm:$0x3]  ;;  %v32_v1 = vld [vmem:[%s2778_s1 + $0xa] sm:$0x3] }
 0x187   :  { %v343_v8 = vrot.slane %v316_v4, 2 }
 0x188   :  { %v341_v9 = vmax.f32 %v340_v5, %v310_v3 }
 0x189   :  { %v322_v10 = vpop.xlane.xlu0 %321 }
 0x18a   :  { %v345_v11 = vmax.f32 %v341_v9, %v343_v8  ;;  %v328_v12 = vpop.xlane.xlu1 %327  ;;  %v347_v13 = vrot.slane %v322_v10, 4  ;;  %v31_v8 = vld [vmem:[%s2778_s1 + $0x8] sm:$0x3]  ;;  %v446_v9 = vrot.slane %v29_v60, 4 }
 0x18b   :  { %v351_v14 = vrot.slane %v328_v12, 6 }
 0x18c   :  { %v349_v15 = vmax.f32 %v345_v11, %v347_v13 }
 0x18e   :  { %v353_v16 = vmax.f32 %v349_v15, %v351_v14 }
 0x190   :  { %v354_v17 = vsub.f32 %v276_v59, %v353_v16  ;;  %v358_v18 = vrot.slane %v353_v16, 6  ;;  %v363_v19 = vrot.slane %v353_v16, 4  ;;  %v368_v20 = vrot.slane %v353_v16, 2  ;;  %v28_v59 = vld [vmem:[%s2778_s1 + $0x2] sm:$0x3] }
 0x191   :  { %v373_v30 = vsub.f32 %v310_v3, %v353_v16  ;;  %v34_v3 = vld [vmem:[%s2778_s1 + $0xe] sm:$0x3]  ;;  %v426_v5 = vrot.slane %v28_v59, 6  ;;  %v466_v16 = vrot.slane %v30_v63, 2 }
 0x192   :  { %v355_v21 = vmul.f32 1.442695, %v354_v17  ;;  %v360_v22 = vsub.f32 %v286_v56, %v358_v18  ;;  %v365_v23 = vsub.f32 %v295_v57, %v363_v19  ;;  %v370_v24 = vsub.f32 %v304_v61, %v368_v20  ;;  %v33_v61 = vld [vmem:[%s2778_s1 + $0xc] sm:$0x3] }
 0x193   :  { %v376_v28 = vsub.f32 %v316_v4, %v358_v18  ;;  %v379_v31 = vsub.f32 %v322_v10, %v363_v19  ;;  %v382_v33 = vsub.f32 %v328_v12, %v368_v20  ;;  %v374_v34 = vmul.f32 1.442695, %v373_v30 }
 0x194   :  { %v361_v25 = vmul.f32 1.442695, %v360_v22  ;;  %v366_v26 = vmul.f32 1.442695, %v365_v23  ;;  %v371_v27 = vmul.f32 1.442695, %v370_v24  ;;  %2354 = vpow2.f32 %v355_v21 }
 0x195   :  { %v377_v32 = vmul.f32 1.442695, %v376_v28  ;;  %v380_v35 = vmul.f32 1.442695, %v379_v31  ;;  %v383_v36 = vmul.f32 1.442695, %v382_v33 }
 0x196   :  { %2356 = vpow2.f32 %v361_v25  ;;  %v512_v10 = vrot.slane %v33_v61, 4  ;;  %v494_v17 = vrot.slane %v32_v1, 6  ;;  %v530_v18 = vrot.slane %v34_v3, 2 }
 0x197   :  { %2358 = vpow2.f32 %v366_v26 }
 0x198   :  { %2360 = vpow2.f32 %v371_v27 }
 0x199   :  { %2362 = vpow2.f32 %v377_v32 }
 0x19a   :  { %2364 = vpow2.f32 %v374_v34 }
 0x19b   :  { %2366 = vpow2.f32 %v380_v35 }
 0x19c   :  { %2368 = vpow2.f32 %v383_v36 }
 0x19e   :  { %v2355_v37 = vpop.eup %2354 }
 0x1a0   :  { %v2357_v38 = vpop.eup %2356 }
 0x1a1   :  { %v2359_v39 = vpop.eup %2358  ;;  %v386_v40 = vrot.slane %v2357_v38, 2 }
 0x1a2   :  { %v2361_v41 = vpop.eup %2360  ;;  %v390_v43 = vrot.slane %v2359_v39, 4 }
 0x1a3   :  { %v388_v42 = vadd.f32 %v2355_v37, %v386_v40  ;;  %v394_v45 = vrot.slane %v2361_v41, 6  ;;  %v2363_v46 = vpop.eup %2362 }
 0x1a4   :  { %v2365_v47 = vpop.eup %2364  ;;  %v399_v51 = vrot.slane %v2363_v46, 2 }
 0x1a5   :  { %v392_v44 = vadd.f32 %v390_v43, %v388_v42  ;;  %v2367_v49 = vpop.eup %2366 }
 0x1a6   :  { %v2369_v52 = vpop.eup %2368  ;;  %v403_v54 = vrot.slane %v2367_v49, 4 }
 0x1a7   :  { %v396_v48 = vadd.f32 %v394_v45, %v392_v44  ;;  %v407_v56 = vrot.slane %v2369_v52, 6 }
 0x1a9   :  { %v397_v50 = vadd.f32 %v2365_v47, %v396_v48  ;;  %v1905_v48 = vld [vmem:[%s2780_s4 + $0x10] sm:$0xff]  }
 0x1aa   :  { %2202 = vmatpush3.bf16.msra.mxu0 %v1905_v48 }
 0x1ab   :  { %v401_v53 = vadd.f32 %v399_v51, %v397_v50  ;;  %2203 = vmatprep.subr.bf16.mxu0 %v2410_v0  ;;  %v1906_v50 = vld [vmem:[%s2780_s4 + $0x18] sm:$0xff]   ;;  %v2572_v51 = vld [vmem:[%s2780_s4 + $0x8] sm:$0xff]  }
 0x1ad   :  { %v405_v55 = vadd.f32 %v403_v54, %v401_v53  ;;  %v2333_v53 = vld [vmem:[%s2780_s4 + $0x34] sm:$0xff]   ;;  %v2406_v54 = vld [vmem:[%s2780_s4 + $0x3c] sm:$0xff] }
 0x1ae   :  { %2205 = vmatpush3.bf16.msra.mxu0 %v1906_v50 }
 0x1af   :  { %v409_v57 = vadd.f32 %v407_v56, %v405_v55  ;;  %2212 = vmatprep.subr.bf16.mxu0 %v2410_v0  ;;  %v1908_v55 = vld [vmem:[%s2780_s4 + $0x58] sm:$0xff]   ;;  %v1909_v56 = vld [vmem:[%s2780_s4 + $0x60] sm:$0xff]  }
 0x1b1   :  { %v410_v58 = vmax.f32 %v409_v57, 1e-30  ;;  %v2335_v57 = vld [vmem:[%s2780_s4 + $0x7c] sm:$0xff]  }
 0x1b3   :  { %2370 = vrcp.f32 %v410_v58  ;;  %v2407_v58 = vld [vmem:[%s2780_s4 + $0x84] sm:$0xff] }
 0x1bd   :  { %v2371_v4 = vpop.eup %2370 }
 0x1be   :  { %v413_v11 = vmul.f32 %v2371_v4, %v2355_v37  ;;  %v422_v12 = vrot.slane %v2371_v4, 6  ;;  %v482_v13 = vmul.f32 %v2371_v4, %v2365_v47  ;;  %v442_v14 = vrot.slane %v2371_v4, 4 }
 0x1bf   :  { %v462_v15 = vrot.slane %v2371_v4, 2 }
 0x1c0   :  { %v414_v19 = vmul.f32 %v413_v11, %v27_v62  ;;  %v424_v20 = vmul.f32 %v2357_v38, %v422_v12  ;;  %v483_v21 = vmul.f32 %v482_v13, %v31_v8  ;;  %v444_v22 = vmul.f32 %v2359_v39, %v442_v14 }
 0x1c1   :  { %v510_v23 = vmul.f32 %v2367_v49, %v442_v14  ;;  %v464_v24 = vmul.f32 %v2361_v41, %v462_v15  ;;  %v528_v25 = vmul.f32 %v2369_v52, %v462_v15  ;;  %v492_v26 = vmul.f32 %v2363_v46, %v422_v12  ;;  %v2562_v49 = vld [vmem:[%s2780_s4] sm:$0xff]  }
 0x1c2   :  { %417 = vperm.xlu1 %2329, %v414_v19   ;;  %1763 = vst.msk [vmem:[%s2779_s6] sm:$0x3] %vm1762_vm6, %v414_v19  ;;  %v428_v27 = vmul.f32 %v426_v5, %v424_v20  ;;  %1770 = vst.msk [vmem:[%s2779_s6 + $0x8] sm:$0x3] %vm1762_vm6, %v483_v21  ;;  %v448_v28 = vmul.f32 %v446_v9, %v444_v22  ;;  %2208 = vmatpush3.bf16.msra.mxu1 %v2562_v49  ;;  %v186_v52 = vld [vmem:[%s2777_s2] sm:$0x3]  ;;  %v25_v62 = vunpack.c.l.bf16 %v2471_v6 }
 0x1c3   :  { %v514_v30 = vmul.f32 %v512_v10, %v510_v23  ;;  %v468_v31 = vmul.f32 %v466_v16, %v464_v24  ;;  %v496_v32 = vmul.f32 %v494_v17, %v492_v26  ;;  %v532_v33 = vmul.f32 %v530_v18, %v528_v25  ;;  %2209 = vmatprep.subr.bf16.mxu1 %v2410_v0 }
 0x1c4   :  { %434 = vperm.xlu0 %2328, %v428_v27   ;;  %v430_v34 = vrot.slane %v428_v27, 2  ;;  %1765 = vst.msk [vmem:[%s2779_s6] sm:$0xc] %vm1764_vm7, %v428_v27  ;;  %v450_v36 = vrot.slane %v448_v28, 4  ;;  %2027 = vmatmul.mubr.msk.f32.vlgmr.msra.gmra.mrb[4].mxu0 %vm141_vm1, %v186_v52  ;;  %v26_v14 = vunpack.c.h.bf16 %v2471_v6  ;;  %v2642_v6 = vld [vmem:[%s2780_s4 + $0x24] sm:$0xff]  }
 0x1c5   :  { %1767 = vst.msk [vmem:[%s2779_s6] sm:$0x30] %vm1766_vm8, %v448_v28  ;;  %1772 = vst.msk [vmem:[%s2779_s6 + $0x8] sm:$0x30] %vm1766_vm8, %v514_v30  ;;  %v470_v38 = vrot.slane %v468_v31, 6  ;;  %v498_v40 = vrot.slane %v496_v32, 2  ;;  %2214 = vmatpush3.bf16.msra.mxu0 %v2333_v53  ;;  %2048 = vmatprep.mubr.msk.f32.mxu0 %vm2412_vm0, %v2411_v2 }
 0x1c6   :  { %1769 = vst.msk [vmem:[%s2779_s6] sm:$0xc0] %vm1768_vm9, %v468_v31  ;;  %1773 = vst.msk [vmem:[%s2779_s6 + $0x8] sm:$0xc0] %vm1768_vm9, %v532_v33  ;;  %v432_v35 = vadd.f32 %v430_v34, %v414_v19  ;;  %487 = vperm.xlu1 %2329, %v483_v21   ;;  %v516_v43 = vrot.slane %v514_v30, 4  ;;  %v534_v45 = vrot.slane %v532_v33, 6  ;;  %2211 = vmatpush3.bf16.msra.mxu1 %v2572_v51 }
 0x1c7   :  { %1771 = vst.msk [vmem:[%s2779_s6 + $0x8] sm:$0xc] %vm1764_vm7, %v496_v32  ;;  %2218 = vmatprep.subr.bf16.mxu1 %v2410_v0  ;;  %2215 = vmatprep.subr.bf16.mxu0 %v2410_v0  ;;  %v2659_v34 = vld [vmem:[%s2780_s4 + $0x48] sm:$0xff]  }
 0x1c8   :  { %v452_v37 = vadd.f32 %v450_v36, %v432_v35  ;;  %v2669_v35 = vld [vmem:[%s2780_s4 + $0x50] sm:$0xff]  }
 0x1c9   :  { %2217 = vmatpush3.bf16.msra.mxu0 %v2406_v54  ;;  %v2675_v36 = vld [vmem:[%s2780_s4 + $0x6c] sm:$0xff]  }
 0x1ca   :  { %454 = vperm.xlu1 %2329, %v448_v28   ;;  %v472_v39 = vadd.f32 %v470_v38, %v452_v37  ;;  %2224 = vmatprep.subr.bf16.mxu0 %v2410_v0  ;;  %v2683_v37 = vld [vmem:[%s2780_s4 + $0x74] sm:$0xff] }
 0x1cc   :  { %v484_v41 = vadd.f32 %v483_v21, %v472_v39  ;;  %2049 = vmatmul.mubr.msk.f32.vlgmr.msra.gmra.mrb[6].mxu0 %vm141_vm1, %v186_v52 }
 0x1cd   :  { %2226 = vmatpush3.bf16.msra.mxu0 %v1908_v55  ;;  %2070 = vmatprep.mubr.msk.f32.mxu0 %vm2412_vm0, %v2411_v2 }
 0x1ce   :  { %474 = vperm.xlu1 %2329, %v468_v31   ;;  %v500_v42 = vadd.f32 %v498_v40, %v484_v41  ;;  %2227 = vmatprep.subr.bf16.mxu0 %v2410_v0 }
 0x1d0   :  { %v518_v44 = vadd.f32 %v516_v43, %v500_v42 }
 0x1d1   :  { %2229 = vmatpush3.bf16.msra.mxu0 %v1909_v56 }
 0x1d2   :  { %502 = vperm.xlu1 %2329, %v496_v32   ;;  %v536_v46 = vadd.f32 %v534_v45, %v518_v44  ;;  %2236 = vmatprep.subr.bf16.mxu0 %v2410_v0 }
 0x1d4   :  { %v546_v47 = vmax.f32 %v536_v46, 1e-05  ;;  %2071 = vmatmul.mubr.msk.f32.vlgmr.msra.gmra.mrb[8].mxu0 %vm141_vm1, %v186_v52 }
 0x1d5   :  { %2238 = vmatpush3.bf16.msra.mxu0 %v2335_v57  ;;  %2092 = vmatprep.mubr.msk.f32.mxu0 %vm2412_vm0, %v2411_v2 }
 0x1d6   :  { %549 = vperm.xlu1 %2329, %v546_v47   ;;  %2239 = vmatprep.subr.bf16.mxu0 %v2410_v0 }
 0x1d9   :  { %2241 = vmatpush3.bf16.msra.mxu0 %v2407_v58 }
 0x1da   :  { %520 = vperm.xlu1 %2329, %v514_v30   ;;  %2248 = vmatprep.subr.bf16.mxu0 %v2410_v0 }
 0x1dc   :  { %2093 = vmatmul.mubr.msk.f32.vlgmr.msra.gmra.mrb[10].mxu0 %vm141_vm1, %v186_v52  ;;  %v1806_v52 = vld [vmem:[%s2780_s4 + $0x44] sm:$0x1] }
 0x1dd   :  { %2250 = vmatpush3.bf16.msra.mxu0 %v1905_v48  ;;  %2114 = vmatprep.mubr.msk.f32.mxu0 %vm2412_vm0, %v2411_v2  ;;  %v116_v48 = vld [vmem:[%s2780_s4 + $0x20] sm:$0x1] }
 0x1de   :  { %538 = vperm.xlu1 %2329, %v532_v33   ;;  %2251 = vmatprep.subr.bf16.mxu0 %v2410_v0  ;;  %v2649_v33 = vld [vmem:[%s2780_s4 + $0x2c] sm:$0xff] }
 0x1e1   :  { %2253 = vmatpush3.bf16.msra.mxu0 %v1906_v50 }
 0x1e2   :  { %2260 = vmatprep.subr.bf16.mxu0 %v2410_v0 }
 0x1e4   :  { %2115 = vmatmul.mubr.msk.f32.vlgmr.msra.gmra.mrb[12].mxu0 %vm141_vm1, %v2477_v7 }
 0x1e5   :  { %2262 = vmatpush3.bf16.msra.mxu0 %v2333_v53  ;;  %2136 = vmatprep.mubr.msk.f32.mxu0 %vm2412_vm0, %v2411_v2 }
 0x1e6   :  { %2263 = vmatprep.subr.bf16.mxu0 %v2410_v0 }
 0x1e9   :  { %2265 = vmatpush3.bf16.msra.mxu0 %v2406_v54 }
 0x1ea   :  { %2272 = vmatprep.subr.bf16.mxu0 %v2410_v0 }
 0x1ec   :  { %2137 = vmatmul.mubr.msk.f32.vlgmr.msra.gmra.mrb[14].mxu0 %vm141_vm1, %v2477_v7 }
 0x1ed   :  { %2274 = vmatpush3.bf16.msra.mxu0 %v1908_v55  ;;  %2158 = vmatprep.mubr.msk.f32.mxu0 %vm2412_vm0, %v2411_v2 }
 0x1ee   :  { %2275 = vmatprep.subr.bf16.mxu0 %v2410_v0 }
 0x1f1   :  { %2277 = vmatpush3.bf16.msra.mxu0 %v1909_v56  ;;  %v119_v56 = vunpack.c.l.bf16 %v1806_v52 }
 0x1f2   :  { %2284 = vmatprep.subr.bf16.mxu0 %v2410_v0 }
 0x1f4   :  { %2159 = vmatmul.mubr.msk.f32.vlgmr.msra.gmra.mrb[16].mxu0 %vm141_vm1, %v2477_v7 }
 0x1f5   :  { %2286 = vmatpush3.bf16.msra.mxu0 %v2335_v57  ;;  %2180 = vmatprep.mubr.msk.f32.mxu0 %vm2412_vm0, %v2411_v2 }
 0x1f6   :  { %2287 = vmatprep.subr.bf16.mxu0 %v2410_v0 }
 0x1f9   :  { %2289 = vmatpush3.bf16.msra.mxu0 %v2407_v58  ;;  %v2710_v58 = vrot.slane %v119_v56, %v2492_v29 }
 0x1fc   :  { %2181 = vmatmul.mubr.msk.f32.vlgmr.msra.gmra.mrb[18].mxu0 %vm141_vm1, %v2477_v7 }
 0x241   :  { %v418_v59 = vpop.permute.xlu1 %417 }
 0x242   :  { %v420_v9 = vmul.f32 %v418_v59, %v25_v62 }
 0x243   :  { %v435_v61 = vpop.permute.xlu0 %434 }
 0x244   :  { %v437_v1 = vmul.f32 %v435_v61, %v25_v62 }
 0x245   :  { %v488_v60 = vpop.permute.xlu1 %487 }
 0x246   :  { %v439_v5 = vrot.slane %v437_v1, 2  ;;  %v490_v18 = vmul.f32 %v488_v60, %v26_v14  ;;  %v1807_v60 = vld [vmem:[%s2780_s4 + $0x68] sm:$0x1] }
 0x247   :  { %v121_v1 = vunpack.c.l.bf16 %v1807_v60 }
 0x248   :  { %v441_v12 = vadd.f32 %v439_v5, %v420_v9 }
 0x249   :  { %v455_v63 = vpop.permute.xlu1 %454 }
 0x24a   :  { %v457_v3 = vmul.f32 %v455_v63, %v25_v62 }
 0x24c   :  { %v459_v10 = vrot.slane %v457_v3, 4 }
 0x24d   :  { %v475_v4 = vpop.permute.xlu1 %474 }
 0x24e   :  { %v477_v8 = vmul.f32 %v475_v4, %v25_v62  ;;  %v461_v15 = vadd.f32 %v459_v10, %v441_v12  ;;  %v2717_v4 = vrot.slane %v121_v1, %v2492_v29 }
 0x250   :  { %v479_v13 = vrot.slane %v477_v8, 6  ;;  %v1808_v8 = vld [vmem:[%s2780_s4 + $0x8c] sm:$0x1] }
 0x251   :  { %v503_v11 = vpop.permute.xlu1 %502 }
 0x252   :  { %v481_v16 = vadd.f32 %v479_v13, %v461_v15  ;;  %v505_v17 = vmul.f32 %v503_v11, %v26_v14 }
 0x254   :  { %v491_v20 = vadd.f32 %v490_v18, %v481_v16  ;;  %v507_v21 = vrot.slane %v505_v17, 2 }
 0x255   :  { %v550_v7 = vpop.permute.xlu1 %549 }
 0x256   :  { %2372 = vrcp.f32 %v550_v7  ;;  %v509_v25 = vadd.f32 %v507_v21, %v491_v20 }
 0x259   :  { %v521_v19 = vpop.permute.xlu1 %520 }
 0x25a   :  { %v523_v22 = vmul.f32 %v521_v19, %v26_v14 }
 0x25c   :  { %v525_v23 = vrot.slane %v523_v22, 4 }
 0x25d   :  { %v539_v24 = vpop.permute.xlu1 %538 }
 0x25e   :  { %v541_v26 = vmul.f32 %v539_v24, %v26_v14  ;;  %v527_v27 = vadd.f32 %v525_v23, %v509_v25  ;;  %v123_v14 = vunpack.c.l.bf16 %v1808_v8  ;;  %v1814_v25 = vld [vmem:[%s2777_s2 + $0x4] sm:$0x3] }
 0x260   :  { %v543_v28 = vrot.slane %v541_v26, 6  ;;  %v2373_v31 = vpop.eup %2372  ;;  %v2724_v15 = vrot.slane %v123_v14, %v2492_v29 }
 0x262   :  { %v545_v30 = vadd.f32 %v543_v28, %v527_v27 }
 0x264   :  { %v553_v32 = vmul.f32 %v2373_v31, %v545_v30 }
 0x266   :  { %2038 = vmatmul.mubr.msk.f32.vlgmr.msra.gmra.mrb[2].mxu1 %vm141_vm1, %v553_v32 }
 0x267   :  { %2220 = vmatpush3.bf16.msra.mxu1 %v2642_v6  ;;  %2059 = vmatprep.mubr.msk.f32.mxu1 %vm2412_vm0, %v2411_v2 }
 0x268   :  { %2221 = vmatprep.subr.bf16.mxu1 %v2410_v0 }
 0x26b   :  { %2223 = vmatpush3.bf16.msra.mxu1 %v2649_v33 }
 0x26c   :  { %2230 = vmatprep.subr.bf16.mxu1 %v2410_v0 }
 0x26e   :  { %2060 = vmatmul.mubr.msk.f32.vlgmr.msra.gmra.mrb[4].mxu1 %vm141_vm1, %v553_v32 }
 0x26f   :  { %2232 = vmatpush3.bf16.msra.mxu1 %v2659_v34  ;;  %2081 = vmatprep.mubr.msk.f32.mxu1 %vm2412_vm0, %v2411_v2 }
 0x270   :  { %2233 = vmatprep.subr.bf16.mxu1 %v2410_v0 }
 0x273   :  { %2235 = vmatpush3.bf16.msra.mxu1 %v2669_v35 }
 0x274   :  { %2242 = vmatprep.subr.bf16.mxu1 %v2410_v0 }
 0x276   :  { %2082 = vmatmul.mubr.msk.f32.vlgmr.msra.gmra.mrb[6].mxu1 %vm141_vm1, %v553_v32 }
 0x277   :  { %2244 = vmatpush3.bf16.msra.mxu1 %v2675_v36  ;;  %2103 = vmatprep.mubr.msk.f32.mxu1 %vm2412_vm0, %v2411_v2 }
 0x278   :  { %2245 = vmatprep.subr.bf16.mxu1 %v2410_v0 }
 0x27b   :  { %2247 = vmatpush3.bf16.msra.mxu1 %v2683_v37 }
 0x27c   :  { %2254 = vmatprep.subr.bf16.mxu1 %v2410_v0 }
 0x27e   :  { %2104 = vmatmul.mubr.msk.f32.vlgmr.msra.gmra.mrb[8].mxu1 %vm141_vm1, %v553_v32 }
 0x27f   :  { %2256 = vmatpush3.bf16.msra.mxu1 %v2562_v49  ;;  %2125 = vmatprep.mubr.msk.f32.mxu1 %vm2412_vm0, %v2411_v2  ;;  %v117_v49 = vunpack.c.l.bf16 %v116_v48 }
 0x280   :  { %2257 = vmatprep.subr.bf16.mxu1 %v2410_v0 }
 0x281   :  { %v2703_v50 = vrot.slane %v117_v49, %v2492_v29 }
 0x283   :  { %2259 = vmatpush3.bf16.msra.mxu1 %v2572_v51 }
 0x284   :  { %2266 = vmatprep.subr.bf16.mxu1 %v2410_v0 }
 0x297   :  { %v623_v38 = vpop.f32.mrb[4].mxu0 }
 0x298   :  { %v2028_v39 = vpop.f32.mrb[5].mxu0 }
 0x29f   :  { %v771_v40 = vpop.f32.mrb[6].mxu0 }
 0x2a0   :  { %v2050_v41 = vpop.f32.mrb[7].mxu0 }
 0x2a7   :  { %v916_v42 = vpop.f32.mrb[8].mxu0 }
 0x2a8   :  { %v2072_v43 = vpop.f32.mrb[9].mxu0 }
 0x2af   :  { %v1061_v44 = vpop.f32.mrb[10].mxu0 }
 0x2b0   :  { %v2094_v45 = vpop.f32.mrb[11].mxu0 }
 0x2b7   :  { %v2697_v46 = vpop.f32.mrb[12].mxu0 }
 0x2b8   :  { %v2116_v47 = vpop.f32.mrb[13].mxu0 }
 0x339   :  { %v696_v51 = vpop.f32.mrb[2].mxu1 }
 0x33a   :  { %v697_v53 = vadd.f32 %v696_v51, %v623_v38  ;;  %v2039_v54 = vpop.f32.mrb[3].mxu1 }
 0x33c   :  { %v704_v55 = vadd.f32 %v2703_v50, %v697_v53 }
 0x33e   :  { %v1825_v57 = vmul.f32 -1.442695, %v704_v55 }
 0x340   :  { %2374 = vpow2.f32 %v1825_v57 }
 0x341   :  { %v841_v59 = vpop.f32.mrb[4].mxu1 }
 0x342   :  { %v842_v61 = vadd.f32 %v841_v59, %v771_v40  ;;  %v2061_v62 = vpop.f32.mrb[5].mxu1 }
 0x344   :  { %v849_v63 = vadd.f32 %v2710_v58, %v842_v61 }
 0x346   :  { %v1826_v3 = vmul.f32 -1.442695, %v849_v63 }
 0x348   :  { %2376 = vpow2.f32 %v1826_v3 }
 0x349   :  { %v986_v5 = vpop.f32.mrb[6].mxu1 }
 0x34a   :  { %v2375_v9 = vpop.eup %2374  ;;  %v987_v10 = vadd.f32 %v986_v5, %v916_v42  ;;  %v2083_v11 = vpop.f32.mrb[7].mxu1 }
 0x34b   :  { %v1143_v12 = vadd.f32 1.0, %v2375_v9 }
 0x34c   :  { %v994_v13 = vadd.f32 %v2717_v4, %v987_v10 }
 0x34d   :  { %2378 = vrcp.f32 %v1143_v12 }
 0x34e   :  { %2380 = vtanh.f32 %v994_v13 }
 0x351   :  { %v1131_v7 = vpop.f32.mrb[8].mxu1 }
 0x352   :  { %v2377_v16 = vpop.eup %2376  ;;  %v1132_v17 = vadd.f32 %v1131_v7, %v1061_v44  ;;  %v2105_v18 = vpop.f32.mrb[9].mxu1 }
 0x353   :  { %v1149_v19 = vadd.f32 1.0, %v2377_v16 }
 0x354   :  { %v1139_v20 = vadd.f32 %v2724_v15, %v1132_v17 }
 0x355   :  { %2382 = vrcp.f32 %v1149_v19 }
 0x356   :  { %v1827_v21 = vmul.f32 -1.442695, %v1139_v20 }
 0x357   :  { %v2379_v22 = vpop.eup %2378 }
 0x358   :  { %v2381_v23 = vpop.eup %2380  ;;  %2384 = vpow2.f32 %v1827_v21 }
 0x359   :  { %v1160_v24 = vmul.f32 %v2381_v23, %v2379_v22 }
 0x35f   :  { %v2383_v26 = vpop.eup %2382 }
 0x360   :  { %v1159_v29 = vmul.f32 %v2383_v26, %v1814_v25 }
 0x362   :  { %v2385_v27 = vpop.eup %2384  ;;  %v1161_v28 = vadd.f32 %v1160_v24, %v1159_v29 }
 0x363   :  { %v1156_v30 = vadd.f32 1.0, %v2385_v27 }
 0x364   :  { %2386 = vtanh.f32 %v1161_v28  ;;  %1839 = vst.msk [vmem:[%s2781_s5 + $0x4] sm:$0x3] %vm273_vm4, %v1161_v28 }
 0x365   :  { %2388 = vrcp.f32 %v1156_v30 }
 0x36e   :  { %v2387_v31 = vpop.eup %2386 }
 0x36f   :  { %v2389_v32 = vpop.eup %2388 }
 0x370   :  { %v1163_v38 = vmul.f32 %v2389_v32, %v2387_v31 }
 0x372   :  { %2126 = vmatmul.mubr.msk.f32.vlgmr.msra.gmra.mrb[10].mxu1 %vm141_vm1, %v1163_v38  ;;  %1755 = vst.msk [vmem:[%s2781_s5] sm:$0x3] %vm273_vm4, %v1163_v38 }
 0x373   :  { %2268 = vmatpush3.bf16.msra.mxu1 %v2642_v6  ;;  %2147 = vmatprep.mubr.msk.f32.mxu1 %vm2412_vm0, %v2411_v2  ;;  %v1374_v6 = vpop.f32.mrb[14].mxu0 }
 0x374   :  { %2269 = vmatprep.subr.bf16.mxu1 %v2410_v0 }
 0x377   :  { %2271 = vmatpush3.bf16.msra.mxu1 %v2649_v33  ;;  %v2138_v33 = vpop.f32.mrb[15].mxu0 }
 0x378   :  { %2278 = vmatprep.subr.bf16.mxu1 %v2410_v0 }
 0x379   :  { %v1815_v63 = vld [vmem:[%s2777_s2 + $0x6] sm:$0x3] }
 0x37a   :  { %2148 = vmatmul.mubr.msk.f32.vlgmr.msra.gmra.mrb[12].mxu1 %vm141_vm1, %v1163_v38 }
 0x37b   :  { %2280 = vmatpush3.bf16.msra.mxu1 %v2659_v34  ;;  %2169 = vmatprep.mubr.msk.f32.mxu1 %vm2412_vm0, %v2411_v2  ;;  %v1515_v34 = vpop.f32.mrb[16].mxu0 }
 0x37c   :  { %2281 = vmatprep.subr.bf16.mxu1 %v2410_v0  ;;  %v2160_v39 = vpop.f32.mrb[17].mxu0 }
 0x37f   :  { %2283 = vmatpush3.bf16.msra.mxu1 %v2669_v35  ;;  %v1656_v35 = vpop.f32.mrb[18].mxu0 }
 0x380   :  { %2290 = vmatprep.subr.bf16.mxu1 %v2410_v0  ;;  %v2182_v40 = vpop.f32.mrb[19].mxu0 }
 0x382   :  { %2170 = vmatmul.mubr.msk.f32.vlgmr.msra.gmra.mrb[14].mxu1 %vm141_vm1, %v1163_v38 }
 0x383   :  { %2292 = vmatpush3.bf16.msra.mxu1 %v2675_v36  ;;  %2191 = vmatprep.mubr.msk.f32.mxu1 %vm2412_vm0, %v2411_v2 }
 0x384   :  { %2293 = vmatprep.subr.bf16.mxu1 %v2410_v0 }
 0x387   :  { %2295 = vmatpush3.bf16.msra.mxu1 %v2683_v37 }
 0x38a   :  { %2192 = vmatmul.mubr.msk.f32.vlgmr.msra.gmra.mrb[16].mxu1 %vm141_vm1, %v1163_v38 }
 0x445   :  { %v1303_v41 = vpop.f32.mrb[10].mxu1 }
 0x446   :  { %v1304_v42 = vadd.f32 %v1303_v41, %v2697_v46  ;;  %v2127_v43 = vpop.f32.mrb[11].mxu1 }
 0x448   :  { %v1307_v36 = vadd.f32 %v1304_v42, %v2703_v50 }
 0x44a   :  { %v1836_v44 = vmul.f32 -1.442695, %v1307_v36 }
 0x44c   :  { %2390 = vpow2.f32 %v1836_v44 }
 0x44d   :  { %v1444_v2 = vpop.f32.mrb[12].mxu1 }
 0x44e   :  { %v1445_v0 = vadd.f32 %v1444_v2, %v1374_v6  ;;  %v2149_v45 = vpop.f32.mrb[13].mxu1 }
 0x450   :  { %v1448_v37 = vadd.f32 %v1445_v0, %v2710_v58 }
 0x452   :  { %v1837_v47 = vmul.f32 -1.442695, %v1448_v37 }
 0x454   :  { %2392 = vpow2.f32 %v1837_v47 }
 0x455   :  { %v1585_v48 = vpop.f32.mrb[14].mxu1 }
 0x456   :  { %v2391_v49 = vpop.eup %2390  ;;  %v1586_v51 = vadd.f32 %v1585_v48, %v1515_v34  ;;  %v2171_v52 = vpop.f32.mrb[15].mxu1 }
 0x457   :  { %v1734_v53 = vadd.f32 1.0, %v2391_v49 }
 0x458   :  { %v1589_v54 = vadd.f32 %v1586_v51, %v2717_v4 }
 0x459   :  { %2394 = vrcp.f32 %v1734_v53 }
 0x45a   :  { %2396 = vtanh.f32 %v1589_v54 }
 0x45d   :  { %v1726_v46 = vpop.f32.mrb[16].mxu1 }
 0x45e   :  { %v2393_v50 = vpop.eup %2392  ;;  %v1727_v55 = vadd.f32 %v1726_v46, %v1656_v35  ;;  %v2193_v56 = vpop.f32.mrb[17].mxu1 }
 0x45f   :  { %v1740_v57 = vadd.f32 1.0, %v2393_v50 }
 0x460   :  { %v1730_v59 = vadd.f32 %v1727_v55, %v2724_v15 }
 0x461   :  { %2398 = vrcp.f32 %v1740_v57 }
 0x462   :  { %v1838_v58 = vmul.f32 -1.442695, %v1730_v59 }
 0x463   :  { %v2395_v60 = vpop.eup %2394 }
 0x464   :  { %v2397_v61 = vpop.eup %2396  ;;  %2400 = vpow2.f32 %v1838_v58 }
 0x465   :  { %v1751_v62 = vmul.f32 %v2397_v61, %v2395_v60 }
 0x46b   :  { %v2399_v1 = vpop.eup %2398 }
 0x46c   :  { %v1750_v3 = vmul.f32 %v2399_v1, %v1815_v63 }
 0x46e   :  { %v2401_v4 = vpop.eup %2400  ;;  %v1752_v5 = vadd.f32 %v1751_v62, %v1750_v3 }
 0x46f   :  { %v1747_v8 = vadd.f32 1.0, %v2401_v4 }
 0x470   :  { %2402 = vtanh.f32 %v1752_v5  ;;  %1841 = vst.msk [vmem:[%s2781_s5 + $0x6] sm:$0x3] %vm273_vm4, %v1752_v5 }
 0x471   :  { %2404 = vrcp.f32 %v1747_v8 }
 0x47a   :  { %v2403_v9 = vpop.eup %2402 }
 0x47b   :  { %v2405_v10 = vpop.eup %2404 }
 0x47c   :  { %v1754_v11 = vmul.f32 %v2405_v10, %v2403_v9 }
 0x47e   :  { %1840 = vst.msk [vmem:[%s2781_s5 + $0x2] sm:$0x3] %vm273_vm4, %v1754_v11 }

</bundles_post_ra>
